<compile_context>
chip_gen: v6e
topology: v6e:2x2x1
jax: 0.10.0
libtpu: 0.0.40
codegen_flags: <defaults>
</compile_context>

<pallas_src>
import functools

import jax
import jax.numpy as jnp
import numpy as np
from jax.experimental import pallas as pl
from jax.experimental.pallas import tpu as pltpu


# ------------------------- Fused LSTM-stack + FC kernel ------------------------
def _fused_lstm_fc_kernel(*refs, T, B, H, num_layers):
    f32 = jnp.float32
    if num_layers > 1:
        (x_ref, wih0_ref, whh0_ref, b0_ref,
         wih_r_ref, whh_r_ref, b_r_ref,
         fcw_ref, fcb_ref, out_ref, seq_scr) = refs
    else:
        (x_ref, wih0_ref, whh0_ref, b0_ref,
         fcw_ref, fcb_ref, out_ref, seq_scr) = refs
        wih_r_ref = whh_r_ref = b_r_ref = None

    def run_layer(inp_2d, wih, whh, bias):
        """inp_2d: (B*T, D_in), batch-major rows (row = b*T + t). Returns (B*T, H)."""
        # Hoisted input projection: one MXU matmul covering every timestep.
        xp = (jnp.dot(inp_2d, wih, preferred_element_type=f32) + bias
              ).reshape(B, T, 4 * H)
        h = jnp.zeros((B, H), f32)
        c = jnp.zeros((B, H), f32)
        # Static unroll over time: only sequential matmul per step is h_prev @ W_hh.
        for t in range(T):
            gates = xp[:, t, :] + jnp.dot(h, whh, preferred_element_type=f32)
            i_g = jax.nn.sigmoid(gates[:, 0 * H:1 * H])
            f_g = jax.nn.sigmoid(gates[:, 1 * H:2 * H])
            g_g = jnp.tanh(gates[:, 2 * H:3 * H])
            o_g = jax.nn.sigmoid(gates[:, 3 * H:4 * H])
            c = f_g * c + i_g * g_g
            h = o_g * jnp.tanh(c)
            # Keep the layer's output sequence resident in VMEM scratch.
            seq_scr[:, pl.ds(t, 1), :] = h.reshape(B, 1, H)
        return seq_scr[...].reshape(B * T, H)

    # Layer 0: read the batch_first input directly (no transposes).
    x2d = x_ref[...].astype(f32).reshape(B * T, -1)
    seq2d = run_layer(x2d, wih0_ref[...], whh0_ref[...], b0_ref[...])

    # Remaining layers consume the previous layer's sequence straight out of VMEM.
    for l in range(num_layers - 1):
        seq2d = run_layer(seq2d, wih_r_ref[l], whh_r_ref[l], b_r_ref[l])

    # Fused final Linear epilogue: (B*T, H) @ (H, O) + b, written batch_first.
    y = jnp.dot(seq2d, fcw_ref[...], preferred_element_type=f32) + fcb_ref[...]
    out_ref[...] = y.reshape(B, T, -1).astype(out_ref.dtype)


# ----------------------------- Full module forward -----------------------------
def lstm_generator_forward(x_btd, params):
    """x_btd: (B, T, input_dim) -> (B, T, output_dim). One fused pallas_call."""
    B, T, _ = x_btd.shape
    H = params["hidden_dim"]
    L = len(params["lstm"])
    O = params["fc_w"].shape[0]
    f32 = jnp.float32

    l0 = params["lstm"][0]
    wih0 = l0["w_ih"].T.astype(f32)                                    # (D, 4H)
    whh0 = l0["w_hh"].T.astype(f32)                                    # (H, 4H)
    b0 = (l0["b_ih"] + l0["b_hh"]).reshape(1, 4 * H).astype(f32)       # (1, 4H)

    args = [x_btd.astype(f32), wih0, whh0, b0]
    if L > 1:
        rest = params["lstm"][1:]
        wih_r = jnp.stack([p["w_ih"].T for p in rest]).astype(f32)     # (L-1, H, 4H)
        whh_r = jnp.stack([p["w_hh"].T for p in rest]).astype(f32)     # (L-1, H, 4H)
        b_r = jnp.stack([(p["b_ih"] + p["b_hh"]).reshape(1, 4 * H)
                         for p in rest]).astype(f32)                   # (L-1, 1, 4H)
        args += [wih_r, whh_r, b_r]
    args += [params["fc_w"].T.astype(f32),                             # (H, O)
             params["fc_b"].reshape(1, O).astype(f32)]                 # (1, O)

    kernel = functools.partial(_fused_lstm_fc_kernel, T=T, B=B, H=H, num_layers=L)
    return pl.pallas_call(
        kernel,
        out_shape=jax.ShapeDtypeStruct((B, T, O), f32),
        scratch_shapes=[pltpu.VMEM((B, T, H), f32)],   # inter-layer sequence, VMEM-resident
    )(*args)


# ------------------------------ Pure-JAX reference ------------------------------
def lstm_generator_reference(x_btd, params):
    B, T, _ = x_btd.shape
    H = params["hidden_dim"]
    h_in = jnp.transpose(x_btd, (1, 0, 2)).astype(jnp.float32)
    for layer in params["lstm"]:
        w_ih, w_hh = layer["w_ih"], layer["w_hh"]
        b = layer["b_ih"] + layer["b_hh"]
        h = jnp.zeros((B, H), jnp.float32)
        c = jnp.zeros((B, H), jnp.float32)
        outs = []
        for t in range(T):
            gates = h_in[t] @ w_ih.T + h @ w_hh.T + b
            i_g = jax.nn.sigmoid(gates[:, 0 * H:1 * H])
            f_g = jax.nn.sigmoid(gates[:, 1 * H:2 * H])
            g_g = jnp.tanh(gates[:, 2 * H:3 * H])
            o_g = jax.nn.sigmoid(gates[:, 3 * H:4 * H])
            c = f_g * c + i_g * g_g
            h = o_g * jnp.tanh(c)
            outs.append(h)
        h_in = jnp.stack(outs, axis=0)
    out = h_in @ params["fc_w"].T + params["fc_b"]
    return jnp.transpose(out, (1, 0, 2))


# ----------------------------------- Params -------------------------------------
def init_params(key, input_dim, hidden_dim, num_layers, output_dim):
    params = {"hidden_dim": hidden_dim, "lstm": []}
    scale = 1.0 / np.sqrt(hidden_dim)
    for layer in range(num_layers):
        d_in = input_dim if layer == 0 else hidden_dim
        key, k1, k2, k3, k4 = jax.random.split(key, 5)
        params["lstm"].append({
            "w_ih": jax.random.uniform(k1, (4 * hidden_dim, d_in), jnp.float32, -scale, scale),
            "w_hh": jax.random.uniform(k2, (4 * hidden_dim, hidden_dim), jnp.float32, -scale, scale),
            "b_ih": jax.random.uniform(k3, (4 * hidden_dim,), jnp.float32, -scale, scale),
            "b_hh": jax.random.uniform(k4, (4 * hidden_dim,), jnp.float32, -scale, scale),
        })
    key, k5, k6 = jax.random.split(key, 3)
    params["fc_w"] = jax.random.uniform(k5, (output_dim, hidden_dim), jnp.float32, -scale, scale)
    params["fc_b"] = jax.random.uniform(k6, (output_dim,), jnp.float32, -scale, scale)
    return params


if __name__ == "__main__":
    # Small shapes consistent with the module's forward: x is (batch, seq, input_dim)
    B, T, INPUT_DIM, HIDDEN_DIM, NUM_LAYERS, OUTPUT_DIM = 2, 8, 4, 32, 2, 4

    key = jax.random.PRNGKey(0)
    key, kx = jax.random.split(key)
    x = jax.random.normal(kx, (B, T, INPUT_DIM), jnp.float32)
    params = init_params(key, INPUT_DIM, HIDDEN_DIM, NUM_LAYERS, OUTPUT_DIM)

    out = lstm_generator_forward(x, params)
    out = jax.block_until_ready(out)

    ref = lstm_generator_reference(x, params)
    assert out.shape == (B, T, OUTPUT_DIM), out.shape
    np.testing.assert_allclose(np.asarray(out), np.asarray(ref), atol=1e-4, rtol=1e-4)

    print("KERNEL_OK")
</pallas_src>

<mosaic_0001>
module attributes {stable_mosaic.version = 11 : i64} {
  func.func @_fused_lstm_fc_kernel(%arg0: memref<2x8x4xf32, #tpu.memory_space<vmem>>, %arg1: memref<4x128xf32, #tpu.memory_space<vmem>>, %arg2: memref<32x128xf32, #tpu.memory_space<vmem>>, %arg3: memref<1x128xf32, #tpu.memory_space<vmem>>, %arg4: memref<1x32x128xf32, #tpu.memory_space<vmem>>, %arg5: memref<1x32x128xf32, #tpu.memory_space<vmem>>, %arg6: memref<1x1x128xf32, #tpu.memory_space<vmem>>, %arg7: memref<32x4xf32, #tpu.memory_space<vmem>>, %arg8: memref<1x4xf32, #tpu.memory_space<vmem>>, %arg9: memref<2x8x4xf32, #tpu.memory_space<vmem>>, %arg10: memref<2x8x32xf32, #tpu.memory_space<vmem>>) attributes {dimension_semantics = [], scalar_prefetch = 0 : i64, scratch_operands = 1 : i64, tpu.core_type = #tpu.core_type<tc>} {
    %c0 = arith.constant 0 : index
    %c0_0 = arith.constant 0 : index
    %c0_1 = arith.constant 0 : index
    %0 = vector.load %arg0[%c0, %c0_0, %c0_1] : memref<2x8x4xf32, #tpu.memory_space<vmem>>, vector<2x8x4xf32>
    %1 = vector.shape_cast %0 : vector<2x8x4xf32> to vector<16x4xf32>
    %c0_2 = arith.constant 0 : index
    %c0_3 = arith.constant 0 : index
    %2 = vector.load %arg1[%c0_2, %c0_3] : memref<4x128xf32, #tpu.memory_space<vmem>>, vector<4x128xf32>
    %c0_4 = arith.constant 0 : index
    %c0_5 = arith.constant 0 : index
    %3 = vector.load %arg2[%c0_4, %c0_5] : memref<32x128xf32, #tpu.memory_space<vmem>>, vector<32x128xf32>
    %c0_6 = arith.constant 0 : index
    %c0_7 = arith.constant 0 : index
    %4 = vector.load %arg3[%c0_6, %c0_7] : memref<1x128xf32, #tpu.memory_space<vmem>>, vector<1x128xf32>
    %cst = arith.constant dense<0.000000e+00> : vector<16x128xf32>
    %5 = tpu.matmul %1, %2, %cst {dimension_numbers = #tpu.dot_dimension_numbers<[1], [0], [0], [1], [0, 0, 1, 1], [], []>} : vector<16x4xf32>, vector<4x128xf32>, vector<16x128xf32> -> vector<16x128xf32>
    %6 = vector.broadcast %4 : vector<1x128xf32> to vector<16x128xf32>
    %7 = arith.addf %5, %6 : vector<16x128xf32>
    %8 = vector.shape_cast %7 : vector<16x128xf32> to vector<2x8x128xf32>
    %cst_8 = arith.constant 0.000000e+00 : f32
    %9 = vector.broadcast %cst_8 : f32 to vector<2x32xf32>
    %cst_9 = arith.constant 0.000000e+00 : f32
    %10 = vector.broadcast %cst_9 : f32 to vector<2x32xf32>
    %11 = vector.extract_strided_slice %8 {offsets = [0, 0, 0], sizes = [2, 1, 128], strides = [1, 1, 1]} : vector<2x8x128xf32> to vector<2x1x128xf32>
    %12 = vector.shape_cast %11 : vector<2x1x128xf32> to vector<2x128xf32>
    %cst_10 = arith.constant dense<0.000000e+00> : vector<2x128xf32>
    %13 = tpu.matmul %9, %3, %cst_10 {dimension_numbers = #tpu.dot_dimension_numbers<[1], [0], [0], [1], [0, 0, 1, 1], [], []>} : vector<2x32xf32>, vector<32x128xf32>, vector<2x128xf32> -> vector<2x128xf32>
    %14 = arith.addf %12, %13 : vector<2x128xf32>
    %15 = vector.extract_strided_slice %14 {offsets = [0, 0], sizes = [2, 32], strides = [1, 1]} : vector<2x128xf32> to vector<2x32xf32>
    %16 = arith.negf %15 : vector<2x32xf32>
    %17 = math.exp %16 : vector<2x32xf32>
    %cst_11 = arith.constant 1.000000e+00 : f32
    %18 = vector.broadcast %cst_11 : f32 to vector<2x32xf32>
    %19 = arith.addf %18, %17 : vector<2x32xf32>
    %20 = arith.divf %18, %19 : vector<2x32xf32>
    %21 = vector.extract_strided_slice %14 {offsets = [0, 32], sizes = [2, 32], strides = [1, 1]} : vector<2x128xf32> to vector<2x32xf32>
    %22 = arith.negf %21 : vector<2x32xf32>
    %23 = math.exp %22 : vector<2x32xf32>
    %cst_12 = arith.constant 1.000000e+00 : f32
    %24 = vector.broadcast %cst_12 : f32 to vector<2x32xf32>
    %25 = arith.addf %24, %23 : vector<2x32xf32>
    %26 = arith.divf %24, %25 : vector<2x32xf32>
    %27 = vector.extract_strided_slice %14 {offsets = [0, 64], sizes = [2, 32], strides = [1, 1]} : vector<2x128xf32> to vector<2x32xf32>
    %28 = math.tanh %27 : vector<2x32xf32>
    %29 = vector.extract_strided_slice %14 {offsets = [0, 96], sizes = [2, 32], strides = [1, 1]} : vector<2x128xf32> to vector<2x32xf32>
    %30 = arith.negf %29 : vector<2x32xf32>
    %31 = math.exp %30 : vector<2x32xf32>
    %cst_13 = arith.constant 1.000000e+00 : f32
    %32 = vector.broadcast %cst_13 : f32 to vector<2x32xf32>
    %33 = arith.addf %32, %31 : vector<2x32xf32>
    %34 = arith.divf %32, %33 : vector<2x32xf32>
    %35 = arith.mulf %26, %10 : vector<2x32xf32>
    %36 = arith.mulf %20, %28 : vector<2x32xf32>
    %37 = arith.addf %35, %36 : vector<2x32xf32>
    %38 = math.tanh %37 : vector<2x32xf32>
    %39 = arith.mulf %34, %38 : vector<2x32xf32>
    %40 = vector.shape_cast %39 : vector<2x32xf32> to vector<2x1x32xf32>
    %c0_14 = arith.constant 0 : index
    %c0_15 = arith.constant 0 : index
    %c0_16 = arith.constant 0 : index
    %41 = vector.load %arg10[%c0_14, %c0_15, %c0_16] : memref<2x8x32xf32, #tpu.memory_space<vmem>>, vector<2x1x32xf32>
    tpu.vector_store %arg10[%c0_14, %c0_15, %c0_16], %40 {strides = array<i32>} : memref<2x8x32xf32, #tpu.memory_space<vmem>>, vector<2x1x32xf32>,
    %42 = vector.extract_strided_slice %8 {offsets = [0, 1, 0], sizes = [2, 1, 128], strides = [1, 1, 1]} : vector<2x8x128xf32> to vector<2x1x128xf32>
    %43 = vector.shape_cast %42 : vector<2x1x128xf32> to vector<2x128xf32>
    %cst_17 = arith.constant dense<0.000000e+00> : vector<2x128xf32>
    %44 = tpu.matmul %39, %3, %cst_17 {dimension_numbers = #tpu.dot_dimension_numbers<[1], [0], [0], [1], [0, 0, 1, 1], [], []>} : vector<2x32xf32>, vector<32x128xf32>, vector<2x128xf32> -> vector<2x128xf32>
    %45 = arith.addf %43, %44 : vector<2x128xf32>
    %46 = vector.extract_strided_slice %45 {offsets = [0, 0], sizes = [2, 32], strides = [1, 1]} : vector<2x128xf32> to vector<2x32xf32>
    %47 = arith.negf %46 : vector<2x32xf32>
    %48 = math.exp %47 : vector<2x32xf32>
    %cst_18 = arith.constant 1.000000e+00 : f32
    %49 = vector.broadcast %cst_18 : f32 to vector<2x32xf32>
    %50 = arith.addf %49, %48 : vector<2x32xf32>
    %51 = arith.divf %49, %50 : vector<2x32xf32>
    %52 = vector.extract_strided_slice %45 {offsets = [0, 32], sizes = [2, 32], strides = [1, 1]} : vector<2x128xf32> to vector<2x32xf32>
    %53 = arith.negf %52 : vector<2x32xf32>
    %54 = math.exp %53 : vector<2x32xf32>
    %cst_19 = arith.constant 1.000000e+00 : f32
    %55 = vector.broadcast %cst_19 : f32 to vector<2x32xf32>
    %56 = arith.addf %55, %54 : vector<2x32xf32>
    %57 = arith.divf %55, %56 : vector<2x32xf32>
    %58 = vector.extract_strided_slice %45 {offsets = [0, 64], sizes = [2, 32], strides = [1, 1]} : vector<2x128xf32> to vector<2x32xf32>
    %59 = math.tanh %58 : vector<2x32xf32>
    %60 = vector.extract_strided_slice %45 {offsets = [0, 96], sizes = [2, 32], strides = [1, 1]} : vector<2x128xf32> to vector<2x32xf32>
    %61 = arith.negf %60 : vector<2x32xf32>
    %62 = math.exp %61 : vector<2x32xf32>
    %cst_20 = arith.constant 1.000000e+00 : f32
    %63 = vector.broadcast %cst_20 : f32 to vector<2x32xf32>
    %64 = arith.addf %63, %62 : vector<2x32xf32>
    %65 = arith.divf %63, %64 : vector<2x32xf32>
    %66 = arith.mulf %57, %37 : vector<2x32xf32>
    %67 = arith.mulf %51, %59 : vector<2x32xf32>
    %68 = arith.addf %66, %67 : vector<2x32xf32>
    %69 = math.tanh %68 : vector<2x32xf32>
    %70 = arith.mulf %65, %69 : vector<2x32xf32>
    %71 = vector.shape_cast %70 : vector<2x32xf32> to vector<2x1x32xf32>
    %c0_21 = arith.constant 0 : index
    %c1 = arith.constant 1 : index
    %c0_22 = arith.constant 0 : index
    %72 = vector.load %arg10[%c0_21, %c1, %c0_22] : memref<2x8x32xf32, #tpu.memory_space<vmem>>, vector<2x1x32xf32>
    tpu.vector_store %arg10[%c0_21, %c1, %c0_22], %71 {strides = array<i32>} : memref<2x8x32xf32, #tpu.memory_space<vmem>>, vector<2x1x32xf32>,
    %73 = vector.extract_strided_slice %8 {offsets = [0, 2, 0], sizes = [2, 1, 128], strides = [1, 1, 1]} : vector<2x8x128xf32> to vector<2x1x128xf32>
    %74 = vector.shape_cast %73 : vector<2x1x128xf32> to vector<2x128xf32>
    %cst_23 = arith.constant dense<0.000000e+00> : vector<2x128xf32>
    %75 = tpu.matmul %70, %3, %cst_23 {dimension_numbers = #tpu.dot_dimension_numbers<[1], [0], [0], [1], [0, 0, 1, 1], [], []>} : vector<2x32xf32>, vector<32x128xf32>, vector<2x128xf32> -> vector<2x128xf32>
    %76 = arith.addf %74, %75 : vector<2x128xf32>
    %77 = vector.extract_strided_slice %76 {offsets = [0, 0], sizes = [2, 32], strides = [1, 1]} : vector<2x128xf32> to vector<2x32xf32>
    %78 = arith.negf %77 : vector<2x32xf32>
    %79 = math.exp %78 : vector<2x32xf32>
    %cst_24 = arith.constant 1.000000e+00 : f32
    %80 = vector.broadcast %cst_24 : f32 to vector<2x32xf32>
    %81 = arith.addf %80, %79 : vector<2x32xf32>
    %82 = arith.divf %80, %81 : vector<2x32xf32>
    %83 = vector.extract_strided_slice %76 {offsets = [0, 32], sizes = [2, 32], strides = [1, 1]} : vector<2x128xf32> to vector<2x32xf32>
    %84 = arith.negf %83 : vector<2x32xf32>
    %85 = math.exp %84 : vector<2x32xf32>
    %cst_25 = arith.constant 1.000000e+00 : f32
    %86 = vector.broadcast %cst_25 : f32 to vector<2x32xf32>
    %87 = arith.addf %86, %85 : vector<2x32xf32>
    %88 = arith.divf %86, %87 : vector<2x32xf32>
    %89 = vector.extract_strided_slice %76 {offsets = [0, 64], sizes = [2, 32], strides = [1, 1]} : vector<2x128xf32> to vector<2x32xf32>
    %90 = math.tanh %89 : vector<2x32xf32>
    %91 = vector.extract_strided_slice %76 {offsets = [0, 96], sizes = [2, 32], strides = [1, 1]} : vector<2x128xf32> to vector<2x32xf32>
    %92 = arith.negf %91 : vector<2x32xf32>
    %93 = math.exp %92 : vector<2x32xf32>
    %cst_26 = arith.constant 1.000000e+00 : f32
    %94 = vector.broadcast %cst_26 : f32 to vector<2x32xf32>
    %95 = arith.addf %94, %93 : vector<2x32xf32>
    %96 = arith.divf %94, %95 : vector<2x32xf32>
    %97 = arith.mulf %88, %68 : vector<2x32xf32>
    %98 = arith.mulf %82, %90 : vector<2x32xf32>
    %99 = arith.addf %97, %98 : vector<2x32xf32>
    %100 = math.tanh %99 : vector<2x32xf32>
    %101 = arith.mulf %96, %100 : vector<2x32xf32>
    %102 = vector.shape_cast %101 : vector<2x32xf32> to vector<2x1x32xf32>
    %c0_27 = arith.constant 0 : index
    %c2 = arith.constant 2 : index
    %c0_28 = arith.constant 0 : index
    %103 = vector.load %arg10[%c0_27, %c2, %c0_28] : memref<2x8x32xf32, #tpu.memory_space<vmem>>, vector<2x1x32xf32>
    tpu.vector_store %arg10[%c0_27, %c2, %c0_28], %102 {strides = array<i32>} : memref<2x8x32xf32, #tpu.memory_space<vmem>>, vector<2x1x32xf32>,
    %104 = vector.extract_strided_slice %8 {offsets = [0, 3, 0], sizes = [2, 1, 128], strides = [1, 1, 1]} : vector<2x8x128xf32> to vector<2x1x128xf32>
    %105 = vector.shape_cast %104 : vector<2x1x128xf32> to vector<2x128xf32>
    %cst_29 = arith.constant dense<0.000000e+00> : vector<2x128xf32>
    %106 = tpu.matmul %101, %3, %cst_29 {dimension_numbers = #tpu.dot_dimension_numbers<[1], [0], [0], [1], [0, 0, 1, 1], [], []>} : vector<2x32xf32>, vector<32x128xf32>, vector<2x128xf32> -> vector<2x128xf32>
    %107 = arith.addf %105, %106 : vector<2x128xf32>
    %108 = vector.extract_strided_slice %107 {offsets = [0, 0], sizes = [2, 32], strides = [1, 1]} : vector<2x128xf32> to vector<2x32xf32>
    %109 = arith.negf %108 : vector<2x32xf32>
    %110 = math.exp %109 : vector<2x32xf32>
    %cst_30 = arith.constant 1.000000e+00 : f32
    %111 = vector.broadcast %cst_30 : f32 to vector<2x32xf32>
    %112 = arith.addf %111, %110 : vector<2x32xf32>
    %113 = arith.divf %111, %112 : vector<2x32xf32>
    %114 = vector.extract_strided_slice %107 {offsets = [0, 32], sizes = [2, 32], strides = [1, 1]} : vector<2x128xf32> to vector<2x32xf32>
    %115 = arith.negf %114 : vector<2x32xf32>
    %116 = math.exp %115 : vector<2x32xf32>
    %cst_31 = arith.constant 1.000000e+00 : f32
    %117 = vector.broadcast %cst_31 : f32 to vector<2x32xf32>
    %118 = arith.addf %117, %116 : vector<2x32xf32>
    %119 = arith.divf %117, %118 : vector<2x32xf32>
    %120 = vector.extract_strided_slice %107 {offsets = [0, 64], sizes = [2, 32], strides = [1, 1]} : vector<2x128xf32> to vector<2x32xf32>
    %121 = math.tanh %120 : vector<2x32xf32>
    %122 = vector.extract_strided_slice %107 {offsets = [0, 96], sizes = [2, 32], strides = [1, 1]} : vector<2x128xf32> to vector<2x32xf32>
    %123 = arith.negf %122 : vector<2x32xf32>
    %124 = math.exp %123 : vector<2x32xf32>
    %cst_32 = arith.constant 1.000000e+00 : f32
    %125 = vector.broadcast %cst_32 : f32 to vector<2x32xf32>
    %126 = arith.addf %125, %124 : vector<2x32xf32>
    %127 = arith.divf %125, %126 : vector<2x32xf32>
    %128 = arith.mulf %119, %99 : vector<2x32xf32>
    %129 = arith.mulf %113, %121 : vector<2x32xf32>
    %130 = arith.addf %128, %129 : vector<2x32xf32>
    %131 = math.tanh %130 : vector<2x32xf32>
    %132 = arith.mulf %127, %131 : vector<2x32xf32>
    %133 = vector.shape_cast %132 : vector<2x32xf32> to vector<2x1x32xf32>
    %c0_33 = arith.constant 0 : index
    %c3 = arith.constant 3 : index
    %c0_34 = arith.constant 0 : index
    %134 = vector.load %arg10[%c0_33, %c3, %c0_34] : memref<2x8x32xf32, #tpu.memory_space<vmem>>, vector<2x1x32xf32>
    tpu.vector_store %arg10[%c0_33, %c3, %c0_34], %133 {strides = array<i32>} : memref<2x8x32xf32, #tpu.memory_space<vmem>>, vector<2x1x32xf32>,
    %135 = vector.extract_strided_slice %8 {offsets = [0, 4, 0], sizes = [2, 1, 128], strides = [1, 1, 1]} : vector<2x8x128xf32> to vector<2x1x128xf32>
    %136 = vector.shape_cast %135 : vector<2x1x128xf32> to vector<2x128xf32>
    %cst_35 = arith.constant dense<0.000000e+00> : vector<2x128xf32>
    %137 = tpu.matmul %132, %3, %cst_35 {dimension_numbers = #tpu.dot_dimension_numbers<[1], [0], [0], [1], [0, 0, 1, 1], [], []>} : vector<2x32xf32>, vector<32x128xf32>, vector<2x128xf32> -> vector<2x128xf32>
    %138 = arith.addf %136, %137 : vector<2x128xf32>
    %139 = vector.extract_strided_slice %138 {offsets = [0, 0], sizes = [2, 32], strides = [1, 1]} : vector<2x128xf32> to vector<2x32xf32>
    %140 = arith.negf %139 : vector<2x32xf32>
    %141 = math.exp %140 : vector<2x32xf32>
    %cst_36 = arith.constant 1.000000e+00 : f32
    %142 = vector.broadcast %cst_36 : f32 to vector<2x32xf32>
    %143 = arith.addf %142, %141 : vector<2x32xf32>
    %144 = arith.divf %142, %143 : vector<2x32xf32>
    %145 = vector.extract_strided_slice %138 {offsets = [0, 32], sizes = [2, 32], strides = [1, 1]} : vector<2x128xf32> to vector<2x32xf32>
    %146 = arith.negf %145 : vector<2x32xf32>
    %147 = math.exp %146 : vector<2x32xf32>
    %cst_37 = arith.constant 1.000000e+00 : f32
    %148 = vector.broadcast %cst_37 : f32 to vector<2x32xf32>
    %149 = arith.addf %148, %147 : vector<2x32xf32>
    %150 = arith.divf %148, %149 : vector<2x32xf32>
    %151 = vector.extract_strided_slice %138 {offsets = [0, 64], sizes = [2, 32], strides = [1, 1]} : vector<2x128xf32> to vector<2x32xf32>
    %152 = math.tanh %151 : vector<2x32xf32>
    %153 = vector.extract_strided_slice %138 {offsets = [0, 96], sizes = [2, 32], strides = [1, 1]} : vector<2x128xf32> to vector<2x32xf32>
    %154 = arith.negf %153 : vector<2x32xf32>
    %155 = math.exp %154 : vector<2x32xf32>
    %cst_38 = arith.constant 1.000000e+00 : f32
    %156 = vector.broadcast %cst_38 : f32 to vector<2x32xf32>
    %157 = arith.addf %156, %155 : vector<2x32xf32>
    %158 = arith.divf %156, %157 : vector<2x32xf32>
    %159 = arith.mulf %150, %130 : vector<2x32xf32>
    %160 = arith.mulf %144, %152 : vector<2x32xf32>
    %161 = arith.addf %159, %160 : vector<2x32xf32>
    %162 = math.tanh %161 : vector<2x32xf32>
    %163 = arith.mulf %158, %162 : vector<2x32xf32>
    %164 = vector.shape_cast %163 : vector<2x32xf32> to vector<2x1x32xf32>
    %c0_39 = arith.constant 0 : index
    %c4 = arith.constant 4 : index
    %c0_40 = arith.constant 0 : index
    %165 = vector.load %arg10[%c0_39, %c4, %c0_40] : memref<2x8x32xf32, #tpu.memory_space<vmem>>, vector<2x1x32xf32>
    tpu.vector_store %arg10[%c0_39, %c4, %c0_40], %164 {strides = array<i32>} : memref<2x8x32xf32, #tpu.memory_space<vmem>>, vector<2x1x32xf32>,
    %166 = vector.extract_strided_slice %8 {offsets = [0, 5, 0], sizes = [2, 1, 128], strides = [1, 1, 1]} : vector<2x8x128xf32> to vector<2x1x128xf32>
    %167 = vector.shape_cast %166 : vector<2x1x128xf32> to vector<2x128xf32>
    %cst_41 = arith.constant dense<0.000000e+00> : vector<2x128xf32>
    %168 = tpu.matmul %163, %3, %cst_41 {dimension_numbers = #tpu.dot_dimension_numbers<[1], [0], [0], [1], [0, 0, 1, 1], [], []>} : vector<2x32xf32>, vector<32x128xf32>, vector<2x128xf32> -> vector<2x128xf32>
    %169 = arith.addf %167, %168 : vector<2x128xf32>
    %170 = vector.extract_strided_slice %169 {offsets = [0, 0], sizes = [2, 32], strides = [1, 1]} : vector<2x128xf32> to vector<2x32xf32>
    %171 = arith.negf %170 : vector<2x32xf32>
    %172 = math.exp %171 : vector<2x32xf32>
    %cst_42 = arith.constant 1.000000e+00 : f32
    %173 = vector.broadcast %cst_42 : f32 to vector<2x32xf32>
    %174 = arith.addf %173, %172 : vector<2x32xf32>
    %175 = arith.divf %173, %174 : vector<2x32xf32>
    %176 = vector.extract_strided_slice %169 {offsets = [0, 32], sizes = [2, 32], strides = [1, 1]} : vector<2x128xf32> to vector<2x32xf32>
    %177 = arith.negf %176 : vector<2x32xf32>
    %178 = math.exp %177 : vector<2x32xf32>
    %cst_43 = arith.constant 1.000000e+00 : f32
    %179 = vector.broadcast %cst_43 : f32 to vector<2x32xf32>
    %180 = arith.addf %179, %178 : vector<2x32xf32>
    %181 = arith.divf %179, %180 : vector<2x32xf32>
    %182 = vector.extract_strided_slice %169 {offsets = [0, 64], sizes = [2, 32], strides = [1, 1]} : vector<2x128xf32> to vector<2x32xf32>
    %183 = math.tanh %182 : vector<2x32xf32>
    %184 = vector.extract_strided_slice %169 {offsets = [0, 96], sizes = [2, 32], strides = [1, 1]} : vector<2x128xf32> to vector<2x32xf32>
    %185 = arith.negf %184 : vector<2x32xf32>
    %186 = math.exp %185 : vector<2x32xf32>
    %cst_44 = arith.constant 1.000000e+00 : f32
    %187 = vector.broadcast %cst_44 : f32 to vector<2x32xf32>
    %188 = arith.addf %187, %186 : vector<2x32xf32>
    %189 = arith.divf %187, %188 : vector<2x32xf32>
    %190 = arith.mulf %181, %161 : vector<2x32xf32>
    %191 = arith.mulf %175, %183 : vector<2x32xf32>
    %192 = arith.addf %190, %191 : vector<2x32xf32>
    %193 = math.tanh %192 : vector<2x32xf32>
    %194 = arith.mulf %189, %193 : vector<2x32xf32>
    %195 = vector.shape_cast %194 : vector<2x32xf32> to vector<2x1x32xf32>
    %c0_45 = arith.constant 0 : index
    %c5 = arith.constant 5 : index
    %c0_46 = arith.constant 0 : index
    %196 = vector.load %arg10[%c0_45, %c5, %c0_46] : memref<2x8x32xf32, #tpu.memory_space<vmem>>, vector<2x1x32xf32>
    tpu.vector_store %arg10[%c0_45, %c5, %c0_46], %195 {strides = array<i32>} : memref<2x8x32xf32, #tpu.memory_space<vmem>>, vector<2x1x32xf32>,
    %197 = vector.extract_strided_slice %8 {offsets = [0, 6, 0], sizes = [2, 1, 128], strides = [1, 1, 1]} : vector<2x8x128xf32> to vector<2x1x128xf32>
    %198 = vector.shape_cast %197 : vector<2x1x128xf32> to vector<2x128xf32>
    %cst_47 = arith.constant dense<0.000000e+00> : vector<2x128xf32>
    %199 = tpu.matmul %194, %3, %cst_47 {dimension_numbers = #tpu.dot_dimension_numbers<[1], [0], [0], [1], [0, 0, 1, 1], [], []>} : vector<2x32xf32>, vector<32x128xf32>, vector<2x128xf32> -> vector<2x128xf32>
    %200 = arith.addf %198, %199 : vector<2x128xf32>
    %201 = vector.extract_strided_slice %200 {offsets = [0, 0], sizes = [2, 32], strides = [1, 1]} : vector<2x128xf32> to vector<2x32xf32>
    %202 = arith.negf %201 : vector<2x32xf32>
    %203 = math.exp %202 : vector<2x32xf32>
    %cst_48 = arith.constant 1.000000e+00 : f32
    %204 = vector.broadcast %cst_48 : f32 to vector<2x32xf32>
    %205 = arith.addf %204, %203 : vector<2x32xf32>
    %206 = arith.divf %204, %205 : vector<2x32xf32>
    %207 = vector.extract_strided_slice %200 {offsets = [0, 32], sizes = [2, 32], strides = [1, 1]} : vector<2x128xf32> to vector<2x32xf32>
    %208 = arith.negf %207 : vector<2x32xf32>
    %209 = math.exp %208 : vector<2x32xf32>
    %cst_49 = arith.constant 1.000000e+00 : f32
    %210 = vector.broadcast %cst_49 : f32 to vector<2x32xf32>
    %211 = arith.addf %210, %209 : vector<2x32xf32>
    %212 = arith.divf %210, %211 : vector<2x32xf32>
    %213 = vector.extract_strided_slice %200 {offsets = [0, 64], sizes = [2, 32], strides = [1, 1]} : vector<2x128xf32> to vector<2x32xf32>
    %214 = math.tanh %213 : vector<2x32xf32>
    %215 = vector.extract_strided_slice %200 {offsets = [0, 96], sizes = [2, 32], strides = [1, 1]} : vector<2x128xf32> to vector<2x32xf32>
    %216 = arith.negf %215 : vector<2x32xf32>
    %217 = math.exp %216 : vector<2x32xf32>
    %cst_50 = arith.constant 1.000000e+00 : f32
    %218 = vector.broadcast %cst_50 : f32 to vector<2x32xf32>
    %219 = arith.addf %218, %217 : vector<2x32xf32>
    %220 = arith.divf %218, %219 : vector<2x32xf32>
    %221 = arith.mulf %212, %192 : vector<2x32xf32>
    %222 = arith.mulf %206, %214 : vector<2x32xf32>
    %223 = arith.addf %221, %222 : vector<2x32xf32>
    %224 = math.tanh %223 : vector<2x32xf32>
    %225 = arith.mulf %220, %224 : vector<2x32xf32>
    %226 = vector.shape_cast %225 : vector<2x32xf32> to vector<2x1x32xf32>
    %c0_51 = arith.constant 0 : index
    %c6 = arith.constant 6 : index
    %c0_52 = arith.constant 0 : index
    %227 = vector.load %arg10[%c0_51, %c6, %c0_52] : memref<2x8x32xf32, #tpu.memory_space<vmem>>, vector<2x1x32xf32>
    tpu.vector_store %arg10[%c0_51, %c6, %c0_52], %226 {strides = array<i32>} : memref<2x8x32xf32, #tpu.memory_space<vmem>>, vector<2x1x32xf32>,
    %228 = vector.extract_strided_slice %8 {offsets = [0, 7, 0], sizes = [2, 1, 128], strides = [1, 1, 1]} : vector<2x8x128xf32> to vector<2x1x128xf32>
    %229 = vector.shape_cast %228 : vector<2x1x128xf32> to vector<2x128xf32>
    %cst_53 = arith.constant dense<0.000000e+00> : vector<2x128xf32>
    %230 = tpu.matmul %225, %3, %cst_53 {dimension_numbers = #tpu.dot_dimension_numbers<[1], [0], [0], [1], [0, 0, 1, 1], [], []>} : vector<2x32xf32>, vector<32x128xf32>, vector<2x128xf32> -> vector<2x128xf32>
    %231 = arith.addf %229, %230 : vector<2x128xf32>
    %232 = vector.extract_strided_slice %231 {offsets = [0, 0], sizes = [2, 32], strides = [1, 1]} : vector<2x128xf32> to vector<2x32xf32>
    %233 = arith.negf %232 : vector<2x32xf32>
    %234 = math.exp %233 : vector<2x32xf32>
    %cst_54 = arith.constant 1.000000e+00 : f32
    %235 = vector.broadcast %cst_54 : f32 to vector<2x32xf32>
    %236 = arith.addf %235, %234 : vector<2x32xf32>
    %237 = arith.divf %235, %236 : vector<2x32xf32>
    %238 = vector.extract_strided_slice %231 {offsets = [0, 32], sizes = [2, 32], strides = [1, 1]} : vector<2x128xf32> to vector<2x32xf32>
    %239 = arith.negf %238 : vector<2x32xf32>
    %240 = math.exp %239 : vector<2x32xf32>
    %cst_55 = arith.constant 1.000000e+00 : f32
    %241 = vector.broadcast %cst_55 : f32 to vector<2x32xf32>
    %242 = arith.addf %241, %240 : vector<2x32xf32>
    %243 = arith.divf %241, %242 : vector<2x32xf32>
    %244 = vector.extract_strided_slice %231 {offsets = [0, 64], sizes = [2, 32], strides = [1, 1]} : vector<2x128xf32> to vector<2x32xf32>
    %245 = math.tanh %244 : vector<2x32xf32>
    %246 = vector.extract_strided_slice %231 {offsets = [0, 96], sizes = [2, 32], strides = [1, 1]} : vector<2x128xf32> to vector<2x32xf32>
    %247 = arith.negf %246 : vector<2x32xf32>
    %248 = math.exp %247 : vector<2x32xf32>
    %cst_56 = arith.constant 1.000000e+00 : f32
    %249 = vector.broadcast %cst_56 : f32 to vector<2x32xf32>
    %250 = arith.addf %249, %248 : vector<2x32xf32>
    %251 = arith.divf %249, %250 : vector<2x32xf32>
    %252 = arith.mulf %243, %223 : vector<2x32xf32>
    %253 = arith.mulf %237, %245 : vector<2x32xf32>
    %254 = arith.addf %252, %253 : vector<2x32xf32>
    %255 = math.tanh %254 : vector<2x32xf32>
    %256 = arith.mulf %251, %255 : vector<2x32xf32>
    %257 = vector.shape_cast %256 : vector<2x32xf32> to vector<2x1x32xf32>
    %c0_57 = arith.constant 0 : index
    %c7 = arith.constant 7 : index
    %c0_58 = arith.constant 0 : index
    %258 = vector.load %arg10[%c0_57, %c7, %c0_58] : memref<2x8x32xf32, #tpu.memory_space<vmem>>, vector<2x1x32xf32>
    tpu.vector_store %arg10[%c0_57, %c7, %c0_58], %257 {strides = array<i32>} : memref<2x8x32xf32, #tpu.memory_space<vmem>>, vector<2x1x32xf32>,
    %c0_59 = arith.constant 0 : index
    %c0_60 = arith.constant 0 : index
    %c0_61 = arith.constant 0 : index
    %259 = vector.load %arg10[%c0_59, %c0_60, %c0_61] : memref<2x8x32xf32, #tpu.memory_space<vmem>>, vector<2x8x32xf32>
    %260 = vector.shape_cast %259 : vector<2x8x32xf32> to vector<16x32xf32>
    %c0_62 = arith.constant 0 : index
    %c0_63 = arith.constant 0 : index
    %c0_64 = arith.constant 0 : index
    %261 = vector.load %arg4[%c0_62, %c0_63, %c0_64] : memref<1x32x128xf32, #tpu.memory_space<vmem>>, vector<1x32x128xf32>
    %262 = vector.shape_cast %261 : vector<1x32x128xf32> to vector<32x128xf32>
    %c0_65 = arith.constant 0 : index
    %c0_66 = arith.constant 0 : index
    %c0_67 = arith.constant 0 : index
    %263 = vector.load %arg5[%c0_65, %c0_66, %c0_67] : memref<1x32x128xf32, #tpu.memory_space<vmem>>, vector<1x32x128xf32>
    %264 = vector.shape_cast %263 : vector<1x32x128xf32> to vector<32x128xf32>
    %c0_68 = arith.constant 0 : index
    %c0_69 = arith.constant 0 : index
    %c0_70 = arith.constant 0 : index
    %265 = vector.load %arg6[%c0_68, %c0_69, %c0_70] : memref<1x1x128xf32, #tpu.memory_space<vmem>>, vector<1x1x128xf32>
    %266 = vector.shape_cast %265 : vector<1x1x128xf32> to vector<1x128xf32>
    %cst_71 = arith.constant dense<0.000000e+00> : vector<16x128xf32>
    %267 = tpu.matmul %260, %262, %cst_71 {dimension_numbers = #tpu.dot_dimension_numbers<[1], [0], [0], [1], [0, 0, 1, 1], [], []>} : vector<16x32xf32>, vector<32x128xf32>, vector<16x128xf32> -> vector<16x128xf32>
    %268 = vector.broadcast %266 : vector<1x128xf32> to vector<16x128xf32>
    %269 = arith.addf %267, %268 : vector<16x128xf32>
    %270 = vector.shape_cast %269 : vector<16x128xf32> to vector<2x8x128xf32>
    %cst_72 = arith.constant 0.000000e+00 : f32
    %271 = vector.broadcast %cst_72 : f32 to vector<2x32xf32>
    %cst_73 = arith.constant 0.000000e+00 : f32
    %272 = vector.broadcast %cst_73 : f32 to vector<2x32xf32>
    %273 = vector.extract_strided_slice %270 {offsets = [0, 0, 0], sizes = [2, 1, 128], strides = [1, 1, 1]} : vector<2x8x128xf32> to vector<2x1x128xf32>
    %274 = vector.shape_cast %273 : vector<2x1x128xf32> to vector<2x128xf32>
    %cst_74 = arith.constant dense<0.000000e+00> : vector<2x128xf32>
    %275 = tpu.matmul %271, %264, %cst_74 {dimension_numbers = #tpu.dot_dimension_numbers<[1], [0], [0], [1], [0, 0, 1, 1], [], []>} : vector<2x32xf32>, vector<32x128xf32>, vector<2x128xf32> -> vector<2x128xf32>
    %276 = arith.addf %274, %275 : vector<2x128xf32>
    %277 = vector.extract_strided_slice %276 {offsets = [0, 0], sizes = [2, 32], strides = [1, 1]} : vector<2x128xf32> to vector<2x32xf32>
    %278 = arith.negf %277 : vector<2x32xf32>
    %279 = math.exp %278 : vector<2x32xf32>
    %cst_75 = arith.constant 1.000000e+00 : f32
    %280 = vector.broadcast %cst_75 : f32 to vector<2x32xf32>
    %281 = arith.addf %280, %279 : vector<2x32xf32>
    %282 = arith.divf %280, %281 : vector<2x32xf32>
    %283 = vector.extract_strided_slice %276 {offsets = [0, 32], sizes = [2, 32], strides = [1, 1]} : vector<2x128xf32> to vector<2x32xf32>
    %284 = arith.negf %283 : vector<2x32xf32>
    %285 = math.exp %284 : vector<2x32xf32>
    %cst_76 = arith.constant 1.000000e+00 : f32
    %286 = vector.broadcast %cst_76 : f32 to vector<2x32xf32>
    %287 = arith.addf %286, %285 : vector<2x32xf32>
    %288 = arith.divf %286, %287 : vector<2x32xf32>
    %289 = vector.extract_strided_slice %276 {offsets = [0, 64], sizes = [2, 32], strides = [1, 1]} : vector<2x128xf32> to vector<2x32xf32>
    %290 = math.tanh %289 : vector<2x32xf32>
    %291 = vector.extract_strided_slice %276 {offsets = [0, 96], sizes = [2, 32], strides = [1, 1]} : vector<2x128xf32> to vector<2x32xf32>
    %292 = arith.negf %291 : vector<2x32xf32>
    %293 = math.exp %292 : vector<2x32xf32>
    %cst_77 = arith.constant 1.000000e+00 : f32
    %294 = vector.broadcast %cst_77 : f32 to vector<2x32xf32>
    %295 = arith.addf %294, %293 : vector<2x32xf32>
    %296 = arith.divf %294, %295 : vector<2x32xf32>
    %297 = arith.mulf %288, %272 : vector<2x32xf32>
    %298 = arith.mulf %282, %290 : vector<2x32xf32>
    %299 = arith.addf %297, %298 : vector<2x32xf32>
    %300 = math.tanh %299 : vector<2x32xf32>
    %301 = arith.mulf %296, %300 : vector<2x32xf32>
    %302 = vector.shape_cast %301 : vector<2x32xf32> to vector<2x1x32xf32>
    %c0_78 = arith.constant 0 : index
    %c0_79 = arith.constant 0 : index
    %c0_80 = arith.constant 0 : index
    %303 = vector.load %arg10[%c0_78, %c0_79, %c0_80] : memref<2x8x32xf32, #tpu.memory_space<vmem>>, vector<2x1x32xf32>
    tpu.vector_store %arg10[%c0_78, %c0_79, %c0_80], %302 {strides = array<i32>} : memref<2x8x32xf32, #tpu.memory_space<vmem>>, vector<2x1x32xf32>,
    %304 = vector.extract_strided_slice %270 {offsets = [0, 1, 0], sizes = [2, 1, 128], strides = [1, 1, 1]} : vector<2x8x128xf32> to vector<2x1x128xf32>
    %305 = vector.shape_cast %304 : vector<2x1x128xf32> to vector<2x128xf32>
    %cst_81 = arith.constant dense<0.000000e+00> : vector<2x128xf32>
    %306 = tpu.matmul %301, %264, %cst_81 {dimension_numbers = #tpu.dot_dimension_numbers<[1], [0], [0], [1], [0, 0, 1, 1], [], []>} : vector<2x32xf32>, vector<32x128xf32>, vector<2x128xf32> -> vector<2x128xf32>
    %307 = arith.addf %305, %306 : vector<2x128xf32>
    %308 = vector.extract_strided_slice %307 {offsets = [0, 0], sizes = [2, 32], strides = [1, 1]} : vector<2x128xf32> to vector<2x32xf32>
    %309 = arith.negf %308 : vector<2x32xf32>
    %310 = math.exp %309 : vector<2x32xf32>
    %cst_82 = arith.constant 1.000000e+00 : f32
    %311 = vector.broadcast %cst_82 : f32 to vector<2x32xf32>
    %312 = arith.addf %311, %310 : vector<2x32xf32>
    %313 = arith.divf %311, %312 : vector<2x32xf32>
    %314 = vector.extract_strided_slice %307 {offsets = [0, 32], sizes = [2, 32], strides = [1, 1]} : vector<2x128xf32> to vector<2x32xf32>
    %315 = arith.negf %314 : vector<2x32xf32>
    %316 = math.exp %315 : vector<2x32xf32>
    %cst_83 = arith.constant 1.000000e+00 : f32
    %317 = vector.broadcast %cst_83 : f32 to vector<2x32xf32>
    %318 = arith.addf %317, %316 : vector<2x32xf32>
    %319 = arith.divf %317, %318 : vector<2x32xf32>
    %320 = vector.extract_strided_slice %307 {offsets = [0, 64], sizes = [2, 32], strides = [1, 1]} : vector<2x128xf32> to vector<2x32xf32>
    %321 = math.tanh %320 : vector<2x32xf32>
    %322 = vector.extract_strided_slice %307 {offsets = [0, 96], sizes = [2, 32], strides = [1, 1]} : vector<2x128xf32> to vector<2x32xf32>
    %323 = arith.negf %322 : vector<2x32xf32>
    %324 = math.exp %323 : vector<2x32xf32>
    %cst_84 = arith.constant 1.000000e+00 : f32
    %325 = vector.broadcast %cst_84 : f32 to vector<2x32xf32>
    %326 = arith.addf %325, %324 : vector<2x32xf32>
    %327 = arith.divf %325, %326 : vector<2x32xf32>
    %328 = arith.mulf %319, %299 : vector<2x32xf32>
    %329 = arith.mulf %313, %321 : vector<2x32xf32>
    %330 = arith.addf %328, %329 : vector<2x32xf32>
    %331 = math.tanh %330 : vector<2x32xf32>
    %332 = arith.mulf %327, %331 : vector<2x32xf32>
    %333 = vector.shape_cast %332 : vector<2x32xf32> to vector<2x1x32xf32>
    %c0_85 = arith.constant 0 : index
    %c1_86 = arith.constant 1 : index
    %c0_87 = arith.constant 0 : index
    %334 = vector.load %arg10[%c0_85, %c1_86, %c0_87] : memref<2x8x32xf32, #tpu.memory_space<vmem>>, vector<2x1x32xf32>
    tpu.vector_store %arg10[%c0_85, %c1_86, %c0_87], %333 {strides = array<i32>} : memref<2x8x32xf32, #tpu.memory_space<vmem>>, vector<2x1x32xf32>,
    %335 = vector.extract_strided_slice %270 {offsets = [0, 2, 0], sizes = [2, 1, 128], strides = [1, 1, 1]} : vector<2x8x128xf32> to vector<2x1x128xf32>
    %336 = vector.shape_cast %335 : vector<2x1x128xf32> to vector<2x128xf32>
    %cst_88 = arith.constant dense<0.000000e+00> : vector<2x128xf32>
    %337 = tpu.matmul %332, %264, %cst_88 {dimension_numbers = #tpu.dot_dimension_numbers<[1], [0], [0], [1], [0, 0, 1, 1], [], []>} : vector<2x32xf32>, vector<32x128xf32>, vector<2x128xf32> -> vector<2x128xf32>
    %338 = arith.addf %336, %337 : vector<2x128xf32>
    %339 = vector.extract_strided_slice %338 {offsets = [0, 0], sizes = [2, 32], strides = [1, 1]} : vector<2x128xf32> to vector<2x32xf32>
    %340 = arith.negf %339 : vector<2x32xf32>
    %341 = math.exp %340 : vector<2x32xf32>
    %cst_89 = arith.constant 1.000000e+00 : f32
    %342 = vector.broadcast %cst_89 : f32 to vector<2x32xf32>
    %343 = arith.addf %342, %341 : vector<2x32xf32>
    %344 = arith.divf %342, %343 : vector<2x32xf32>
    %345 = vector.extract_strided_slice %338 {offsets = [0, 32], sizes = [2, 32], strides = [1, 1]} : vector<2x128xf32> to vector<2x32xf32>
    %346 = arith.negf %345 : vector<2x32xf32>
    %347 = math.exp %346 : vector<2x32xf32>
    %cst_90 = arith.constant 1.000000e+00 : f32
    %348 = vector.broadcast %cst_90 : f32 to vector<2x32xf32>
    %349 = arith.addf %348, %347 : vector<2x32xf32>
    %350 = arith.divf %348, %349 : vector<2x32xf32>
    %351 = vector.extract_strided_slice %338 {offsets = [0, 64], sizes = [2, 32], strides = [1, 1]} : vector<2x128xf32> to vector<2x32xf32>
    %352 = math.tanh %351 : vector<2x32xf32>
    %353 = vector.extract_strided_slice %338 {offsets = [0, 96], sizes = [2, 32], strides = [1, 1]} : vector<2x128xf32> to vector<2x32xf32>
    %354 = arith.negf %353 : vector<2x32xf32>
    %355 = math.exp %354 : vector<2x32xf32>
    %cst_91 = arith.constant 1.000000e+00 : f32
    %356 = vector.broadcast %cst_91 : f32 to vector<2x32xf32>
    %357 = arith.addf %356, %355 : vector<2x32xf32>
    %358 = arith.divf %356, %357 : vector<2x32xf32>
    %359 = arith.mulf %350, %330 : vector<2x32xf32>
    %360 = arith.mulf %344, %352 : vector<2x32xf32>
    %361 = arith.addf %359, %360 : vector<2x32xf32>
    %362 = math.tanh %361 : vector<2x32xf32>
    %363 = arith.mulf %358, %362 : vector<2x32xf32>
    %364 = vector.shape_cast %363 : vector<2x32xf32> to vector<2x1x32xf32>
    %c0_92 = arith.constant 0 : index
    %c2_93 = arith.constant 2 : index
    %c0_94 = arith.constant 0 : index
    %365 = vector.load %arg10[%c0_92, %c2_93, %c0_94] : memref<2x8x32xf32, #tpu.memory_space<vmem>>, vector<2x1x32xf32>
    tpu.vector_store %arg10[%c0_92, %c2_93, %c0_94], %364 {strides = array<i32>} : memref<2x8x32xf32, #tpu.memory_space<vmem>>, vector<2x1x32xf32>,
    %366 = vector.extract_strided_slice %270 {offsets = [0, 3, 0], sizes = [2, 1, 128], strides = [1, 1, 1]} : vector<2x8x128xf32> to vector<2x1x128xf32>
    %367 = vector.shape_cast %366 : vector<2x1x128xf32> to vector<2x128xf32>
    %cst_95 = arith.constant dense<0.000000e+00> : vector<2x128xf32>
    %368 = tpu.matmul %363, %264, %cst_95 {dimension_numbers = #tpu.dot_dimension_numbers<[1], [0], [0], [1], [0, 0, 1, 1], [], []>} : vector<2x32xf32>, vector<32x128xf32>, vector<2x128xf32> -> vector<2x128xf32>
    %369 = arith.addf %367, %368 : vector<2x128xf32>
    %370 = vector.extract_strided_slice %369 {offsets = [0, 0], sizes = [2, 32], strides = [1, 1]} : vector<2x128xf32> to vector<2x32xf32>
    %371 = arith.negf %370 : vector<2x32xf32>
    %372 = math.exp %371 : vector<2x32xf32>
    %cst_96 = arith.constant 1.000000e+00 : f32
    %373 = vector.broadcast %cst_96 : f32 to vector<2x32xf32>
    %374 = arith.addf %373, %372 : vector<2x32xf32>
    %375 = arith.divf %373, %374 : vector<2x32xf32>
    %376 = vector.extract_strided_slice %369 {offsets = [0, 32], sizes = [2, 32], strides = [1, 1]} : vector<2x128xf32> to vector<2x32xf32>
    %377 = arith.negf %376 : vector<2x32xf32>
    %378 = math.exp %377 : vector<2x32xf32>
    %cst_97 = arith.constant 1.000000e+00 : f32
    %379 = vector.broadcast %cst_97 : f32 to vector<2x32xf32>
    %380 = arith.addf %379, %378 : vector<2x32xf32>
    %381 = arith.divf %379, %380 : vector<2x32xf32>
    %382 = vector.extract_strided_slice %369 {offsets = [0, 64], sizes = [2, 32], strides = [1, 1]} : vector<2x128xf32> to vector<2x32xf32>
    %383 = math.tanh %382 : vector<2x32xf32>
    %384 = vector.extract_strided_slice %369 {offsets = [0, 96], sizes = [2, 32], strides = [1, 1]} : vector<2x128xf32> to vector<2x32xf32>
    %385 = arith.negf %384 : vector<2x32xf32>
    %386 = math.exp %385 : vector<2x32xf32>
    %cst_98 = arith.constant 1.000000e+00 : f32
    %387 = vector.broadcast %cst_98 : f32 to vector<2x32xf32>
    %388 = arith.addf %387, %386 : vector<2x32xf32>
    %389 = arith.divf %387, %388 : vector<2x32xf32>
    %390 = arith.mulf %381, %361 : vector<2x32xf32>
    %391 = arith.mulf %375, %383 : vector<2x32xf32>
    %392 = arith.addf %390, %391 : vector<2x32xf32>
    %393 = math.tanh %392 : vector<2x32xf32>
    %394 = arith.mulf %389, %393 : vector<2x32xf32>
    %395 = vector.shape_cast %394 : vector<2x32xf32> to vector<2x1x32xf32>
    %c0_99 = arith.constant 0 : index
    %c3_100 = arith.constant 3 : index
    %c0_101 = arith.constant 0 : index
    %396 = vector.load %arg10[%c0_99, %c3_100, %c0_101] : memref<2x8x32xf32, #tpu.memory_space<vmem>>, vector<2x1x32xf32>
    tpu.vector_store %arg10[%c0_99, %c3_100, %c0_101], %395 {strides = array<i32>} : memref<2x8x32xf32, #tpu.memory_space<vmem>>, vector<2x1x32xf32>,
    %397 = vector.extract_strided_slice %270 {offsets = [0, 4, 0], sizes = [2, 1, 128], strides = [1, 1, 1]} : vector<2x8x128xf32> to vector<2x1x128xf32>
    %398 = vector.shape_cast %397 : vector<2x1x128xf32> to vector<2x128xf32>
    %cst_102 = arith.constant dense<0.000000e+00> : vector<2x128xf32>
    %399 = tpu.matmul %394, %264, %cst_102 {dimension_numbers = #tpu.dot_dimension_numbers<[1], [0], [0], [1], [0, 0, 1, 1], [], []>} : vector<2x32xf32>, vector<32x128xf32>, vector<2x128xf32> -> vector<2x128xf32>
    %400 = arith.addf %398, %399 : vector<2x128xf32>
    %401 = vector.extract_strided_slice %400 {offsets = [0, 0], sizes = [2, 32], strides = [1, 1]} : vector<2x128xf32> to vector<2x32xf32>
    %402 = arith.negf %401 : vector<2x32xf32>
    %403 = math.exp %402 : vector<2x32xf32>
    %cst_103 = arith.constant 1.000000e+00 : f32
    %404 = vector.broadcast %cst_103 : f32 to vector<2x32xf32>
    %405 = arith.addf %404, %403 : vector<2x32xf32>
    %406 = arith.divf %404, %405 : vector<2x32xf32>
    %407 = vector.extract_strided_slice %400 {offsets = [0, 32], sizes = [2, 32], strides = [1, 1]} : vector<2x128xf32> to vector<2x32xf32>
    %408 = arith.negf %407 : vector<2x32xf32>
    %409 = math.exp %408 : vector<2x32xf32>
    %cst_104 = arith.constant 1.000000e+00 : f32
    %410 = vector.broadcast %cst_104 : f32 to vector<2x32xf32>
    %411 = arith.addf %410, %409 : vector<2x32xf32>
    %412 = arith.divf %410, %411 : vector<2x32xf32>
    %413 = vector.extract_strided_slice %400 {offsets = [0, 64], sizes = [2, 32], strides = [1, 1]} : vector<2x128xf32> to vector<2x32xf32>
    %414 = math.tanh %413 : vector<2x32xf32>
    %415 = vector.extract_strided_slice %400 {offsets = [0, 96], sizes = [2, 32], strides = [1, 1]} : vector<2x128xf32> to vector<2x32xf32>
    %416 = arith.negf %415 : vector<2x32xf32>
    %417 = math.exp %416 : vector<2x32xf32>
    %cst_105 = arith.constant 1.000000e+00 : f32
    %418 = vector.broadcast %cst_105 : f32 to vector<2x32xf32>
    %419 = arith.addf %418, %417 : vector<2x32xf32>
    %420 = arith.divf %418, %419 : vector<2x32xf32>
    %421 = arith.mulf %412, %392 : vector<2x32xf32>
    %422 = arith.mulf %406, %414 : vector<2x32xf32>
    %423 = arith.addf %421, %422 : vector<2x32xf32>
    %424 = math.tanh %423 : vector<2x32xf32>
    %425 = arith.mulf %420, %424 : vector<2x32xf32>
    %426 = vector.shape_cast %425 : vector<2x32xf32> to vector<2x1x32xf32>
    %c0_106 = arith.constant 0 : index
    %c4_107 = arith.constant 4 : index
    %c0_108 = arith.constant 0 : index
    %427 = vector.load %arg10[%c0_106, %c4_107, %c0_108] : memref<2x8x32xf32, #tpu.memory_space<vmem>>, vector<2x1x32xf32>
    tpu.vector_store %arg10[%c0_106, %c4_107, %c0_108], %426 {strides = array<i32>} : memref<2x8x32xf32, #tpu.memory_space<vmem>>, vector<2x1x32xf32>,
    %428 = vector.extract_strided_slice %270 {offsets = [0, 5, 0], sizes = [2, 1, 128], strides = [1, 1, 1]} : vector<2x8x128xf32> to vector<2x1x128xf32>
    %429 = vector.shape_cast %428 : vector<2x1x128xf32> to vector<2x128xf32>
    %cst_109 = arith.constant dense<0.000000e+00> : vector<2x128xf32>
    %430 = tpu.matmul %425, %264, %cst_109 {dimension_numbers = #tpu.dot_dimension_numbers<[1], [0], [0], [1], [0, 0, 1, 1], [], []>} : vector<2x32xf32>, vector<32x128xf32>, vector<2x128xf32> -> vector<2x128xf32>
    %431 = arith.addf %429, %430 : vector<2x128xf32>
    %432 = vector.extract_strided_slice %431 {offsets = [0, 0], sizes = [2, 32], strides = [1, 1]} : vector<2x128xf32> to vector<2x32xf32>
    %433 = arith.negf %432 : vector<2x32xf32>
    %434 = math.exp %433 : vector<2x32xf32>
    %cst_110 = arith.constant 1.000000e+00 : f32
    %435 = vector.broadcast %cst_110 : f32 to vector<2x32xf32>
    %436 = arith.addf %435, %434 : vector<2x32xf32>
    %437 = arith.divf %435, %436 : vector<2x32xf32>
    %438 = vector.extract_strided_slice %431 {offsets = [0, 32], sizes = [2, 32], strides = [1, 1]} : vector<2x128xf32> to vector<2x32xf32>
    %439 = arith.negf %438 : vector<2x32xf32>
    %440 = math.exp %439 : vector<2x32xf32>
    %cst_111 = arith.constant 1.000000e+00 : f32
    %441 = vector.broadcast %cst_111 : f32 to vector<2x32xf32>
    %442 = arith.addf %441, %440 : vector<2x32xf32>
    %443 = arith.divf %441, %442 : vector<2x32xf32>
    %444 = vector.extract_strided_slice %431 {offsets = [0, 64], sizes = [2, 32], strides = [1, 1]} : vector<2x128xf32> to vector<2x32xf32>
    %445 = math.tanh %444 : vector<2x32xf32>
    %446 = vector.extract_strided_slice %431 {offsets = [0, 96], sizes = [2, 32], strides = [1, 1]} : vector<2x128xf32> to vector<2x32xf32>
    %447 = arith.negf %446 : vector<2x32xf32>
    %448 = math.exp %447 : vector<2x32xf32>
    %cst_112 = arith.constant 1.000000e+00 : f32
    %449 = vector.broadcast %cst_112 : f32 to vector<2x32xf32>
    %450 = arith.addf %449, %448 : vector<2x32xf32>
    %451 = arith.divf %449, %450 : vector<2x32xf32>
    %452 = arith.mulf %443, %423 : vector<2x32xf32>
    %453 = arith.mulf %437, %445 : vector<2x32xf32>
    %454 = arith.addf %452, %453 : vector<2x32xf32>
    %455 = math.tanh %454 : vector<2x32xf32>
    %456 = arith.mulf %451, %455 : vector<2x32xf32>
    %457 = vector.shape_cast %456 : vector<2x32xf32> to vector<2x1x32xf32>
    %c0_113 = arith.constant 0 : index
    %c5_114 = arith.constant 5 : index
    %c0_115 = arith.constant 0 : index
    %458 = vector.load %arg10[%c0_113, %c5_114, %c0_115] : memref<2x8x32xf32, #tpu.memory_space<vmem>>, vector<2x1x32xf32>
    tpu.vector_store %arg10[%c0_113, %c5_114, %c0_115], %457 {strides = array<i32>} : memref<2x8x32xf32, #tpu.memory_space<vmem>>, vector<2x1x32xf32>,
    %459 = vector.extract_strided_slice %270 {offsets = [0, 6, 0], sizes = [2, 1, 128], strides = [1, 1, 1]} : vector<2x8x128xf32> to vector<2x1x128xf32>
    %460 = vector.shape_cast %459 : vector<2x1x128xf32> to vector<2x128xf32>
    %cst_116 = arith.constant dense<0.000000e+00> : vector<2x128xf32>
    %461 = tpu.matmul %456, %264, %cst_116 {dimension_numbers = #tpu.dot_dimension_numbers<[1], [0], [0], [1], [0, 0, 1, 1], [], []>} : vector<2x32xf32>, vector<32x128xf32>, vector<2x128xf32> -> vector<2x128xf32>
    %462 = arith.addf %460, %461 : vector<2x128xf32>
    %463 = vector.extract_strided_slice %462 {offsets = [0, 0], sizes = [2, 32], strides = [1, 1]} : vector<2x128xf32> to vector<2x32xf32>
    %464 = arith.negf %463 : vector<2x32xf32>
    %465 = math.exp %464 : vector<2x32xf32>
    %cst_117 = arith.constant 1.000000e+00 : f32
    %466 = vector.broadcast %cst_117 : f32 to vector<2x32xf32>
    %467 = arith.addf %466, %465 : vector<2x32xf32>
    %468 = arith.divf %466, %467 : vector<2x32xf32>
    %469 = vector.extract_strided_slice %462 {offsets = [0, 32], sizes = [2, 32], strides = [1, 1]} : vector<2x128xf32> to vector<2x32xf32>
    %470 = arith.negf %469 : vector<2x32xf32>
    %471 = math.exp %470 : vector<2x32xf32>
    %cst_118 = arith.constant 1.000000e+00 : f32
    %472 = vector.broadcast %cst_118 : f32 to vector<2x32xf32>
    %473 = arith.addf %472, %471 : vector<2x32xf32>
    %474 = arith.divf %472, %473 : vector<2x32xf32>
    %475 = vector.extract_strided_slice %462 {offsets = [0, 64], sizes = [2, 32], strides = [1, 1]} : vector<2x128xf32> to vector<2x32xf32>
    %476 = math.tanh %475 : vector<2x32xf32>
    %477 = vector.extract_strided_slice %462 {offsets = [0, 96], sizes = [2, 32], strides = [1, 1]} : vector<2x128xf32> to vector<2x32xf32>
    %478 = arith.negf %477 : vector<2x32xf32>
    %479 = math.exp %478 : vector<2x32xf32>
    %cst_119 = arith.constant 1.000000e+00 : f32
    %480 = vector.broadcast %cst_119 : f32 to vector<2x32xf32>
    %481 = arith.addf %480, %479 : vector<2x32xf32>
    %482 = arith.divf %480, %481 : vector<2x32xf32>
    %483 = arith.mulf %474, %454 : vector<2x32xf32>
    %484 = arith.mulf %468, %476 : vector<2x32xf32>
    %485 = arith.addf %483, %484 : vector<2x32xf32>
    %486 = math.tanh %485 : vector<2x32xf32>
    %487 = arith.mulf %482, %486 : vector<2x32xf32>
    %488 = vector.shape_cast %487 : vector<2x32xf32> to vector<2x1x32xf32>
    %c0_120 = arith.constant 0 : index
    %c6_121 = arith.constant 6 : index
    %c0_122 = arith.constant 0 : index
    %489 = vector.load %arg10[%c0_120, %c6_121, %c0_122] : memref<2x8x32xf32, #tpu.memory_space<vmem>>, vector<2x1x32xf32>
    tpu.vector_store %arg10[%c0_120, %c6_121, %c0_122], %488 {strides = array<i32>} : memref<2x8x32xf32, #tpu.memory_space<vmem>>, vector<2x1x32xf32>,
    %490 = vector.extract_strided_slice %270 {offsets = [0, 7, 0], sizes = [2, 1, 128], strides = [1, 1, 1]} : vector<2x8x128xf32> to vector<2x1x128xf32>
    %491 = vector.shape_cast %490 : vector<2x1x128xf32> to vector<2x128xf32>
    %cst_123 = arith.constant dense<0.000000e+00> : vector<2x128xf32>
    %492 = tpu.matmul %487, %264, %cst_123 {dimension_numbers = #tpu.dot_dimension_numbers<[1], [0], [0], [1], [0, 0, 1, 1], [], []>} : vector<2x32xf32>, vector<32x128xf32>, vector<2x128xf32> -> vector<2x128xf32>
    %493 = arith.addf %491, %492 : vector<2x128xf32>
    %494 = vector.extract_strided_slice %493 {offsets = [0, 0], sizes = [2, 32], strides = [1, 1]} : vector<2x128xf32> to vector<2x32xf32>
    %495 = arith.negf %494 : vector<2x32xf32>
    %496 = math.exp %495 : vector<2x32xf32>
    %cst_124 = arith.constant 1.000000e+00 : f32
    %497 = vector.broadcast %cst_124 : f32 to vector<2x32xf32>
    %498 = arith.addf %497, %496 : vector<2x32xf32>
    %499 = arith.divf %497, %498 : vector<2x32xf32>
    %500 = vector.extract_strided_slice %493 {offsets = [0, 32], sizes = [2, 32], strides = [1, 1]} : vector<2x128xf32> to vector<2x32xf32>
    %501 = arith.negf %500 : vector<2x32xf32>
    %502 = math.exp %501 : vector<2x32xf32>
    %cst_125 = arith.constant 1.000000e+00 : f32
    %503 = vector.broadcast %cst_125 : f32 to vector<2x32xf32>
    %504 = arith.addf %503, %502 : vector<2x32xf32>
    %505 = arith.divf %503, %504 : vector<2x32xf32>
    %506 = vector.extract_strided_slice %493 {offsets = [0, 64], sizes = [2, 32], strides = [1, 1]} : vector<2x128xf32> to vector<2x32xf32>
    %507 = math.tanh %506 : vector<2x32xf32>
    %508 = vector.extract_strided_slice %493 {offsets = [0, 96], sizes = [2, 32], strides = [1, 1]} : vector<2x128xf32> to vector<2x32xf32>
    %509 = arith.negf %508 : vector<2x32xf32>
    %510 = math.exp %509 : vector<2x32xf32>
    %cst_126 = arith.constant 1.000000e+00 : f32
    %511 = vector.broadcast %cst_126 : f32 to vector<2x32xf32>
    %512 = arith.addf %511, %510 : vector<2x32xf32>
    %513 = arith.divf %511, %512 : vector<2x32xf32>
    %514 = arith.mulf %505, %485 : vector<2x32xf32>
    %515 = arith.mulf %499, %507 : vector<2x32xf32>
    %516 = arith.addf %514, %515 : vector<2x32xf32>
    %517 = math.tanh %516 : vector<2x32xf32>
    %518 = arith.mulf %513, %517 : vector<2x32xf32>
    %519 = vector.shape_cast %518 : vector<2x32xf32> to vector<2x1x32xf32>
    %c0_127 = arith.constant 0 : index
    %c7_128 = arith.constant 7 : index
    %c0_129 = arith.constant 0 : index
    %520 = vector.load %arg10[%c0_127, %c7_128, %c0_129] : memref<2x8x32xf32, #tpu.memory_space<vmem>>, vector<2x1x32xf32>
    tpu.vector_store %arg10[%c0_127, %c7_128, %c0_129], %519 {strides = array<i32>} : memref<2x8x32xf32, #tpu.memory_space<vmem>>, vector<2x1x32xf32>,
    %c0_130 = arith.constant 0 : index
    %c0_131 = arith.constant 0 : index
    %c0_132 = arith.constant 0 : index
    %521 = vector.load %arg10[%c0_130, %c0_131, %c0_132] : memref<2x8x32xf32, #tpu.memory_space<vmem>>, vector<2x8x32xf32>
    %522 = vector.shape_cast %521 : vector<2x8x32xf32> to vector<16x32xf32>
    %c0_133 = arith.constant 0 : index
    %c0_134 = arith.constant 0 : index
    %523 = vector.load %arg7[%c0_133, %c0_134] : memref<32x4xf32, #tpu.memory_space<vmem>>, vector<32x4xf32>
    %cst_135 = arith.constant dense<0.000000e+00> : vector<16x4xf32>
    %524 = tpu.matmul %522, %523, %cst_135 {dimension_numbers = #tpu.dot_dimension_numbers<[1], [0], [0], [1], [0, 0, 1, 1], [], []>} : vector<16x32xf32>, vector<32x4xf32>, vector<16x4xf32> -> vector<16x4xf32>
    %c0_136 = arith.constant 0 : index
    %c0_137 = arith.constant 0 : index
    %525 = vector.load %arg8[%c0_136, %c0_137] : memref<1x4xf32, #tpu.memory_space<vmem>>, vector<1x4xf32>
    %526 = vector.broadcast %525 : vector<1x4xf32> to vector<16x4xf32>
    %527 = arith.addf %524, %526 : vector<16x4xf32>
    %528 = vector.shape_cast %527 : vector<16x4xf32> to vector<2x8x4xf32>
    %c0_138 = arith.constant 0 : index
    %c0_139 = arith.constant 0 : index
    %c0_140 = arith.constant 0 : index
    %529 = vector.load %arg9[%c0_138, %c0_139, %c0_140] : memref<2x8x4xf32, #tpu.memory_space<vmem>>, vector<2x8x4xf32>
    tpu.vector_store %arg9[%c0_138, %c0_139, %c0_140], %528 {strides = array<i32>} : memref<2x8x4xf32, #tpu.memory_space<vmem>>, vector<2x8x4xf32>,
    return
  }
}

</mosaic_0001>

<bundles_post_ra>
// kernel: tpu_custom_call.1
= control target key start
LH: loop header
LB: loop body
LE: loop exit
PB: predicated region body
PF: predicated region fallthrough
CT: control target
= control target key end

     0   :  { %14 = vsyncpa [#allocation4], 0  ;;  %s4025_s0 = inlined_call_operand.vmem [shape: f32[2,8,4], index: 0, kind: input, shape index: {}]   ;;  %s4026_s1 = inlined_call_operand.hbm [shape: f32[4,128], index: 1, kind: input, shape index: {}]   ;;  %s4027_s2 = inlined_call_operand.vmem [shape: f32[32,128], index: 2, kind: input, shape index: {}]   ;;  %s4028_s3 = inlined_call_operand.vmem [shape: f32[1,128], index: 3, kind: input, shape index: {}]   ;;  %s4029_s4 = inlined_call_operand.vmem [shape: f32[1,32,128], index: 4, kind: input, shape index: {}]   ;;  %s4030_s5 = inlined_call_operand.hbm [shape: f32[1,32,128], index: 5, kind: input, shape index: {}]   ;;  %s4031_s6 = inlined_call_operand.vmem [shape: f32[1,1,128], index: 6, kind: input, shape index: {}]   ;;  %s4032_s7 = inlined_call_operand.vmem [shape: f32[32,4], index: 7, kind: input, shape index: {}]   ;;  %s4033_s8 = inlined_call_operand.vmem [shape: f32[1,4], index: 8, kind: input, shape index: {}]   ;;  %s4034_s9 = inlined_call_operand.vmem [shape: f32[2,8,4], index: 9, kind: output, shape index: {}]  }
   0x1   :  { %15 = vsyncpa [#allocation6], 0  ;;  %s3367_s30 = smov [#allocation3]   ;;  %s3368_s11 = smov [#allocation5]  }
   0x2   :  { %s24_s10 = sshll.u32 %s3367_s30, 4  ;;  %s39_s12 = sshll.u32 %s3368_s11, 4  ;;  %s25_s10 = int_to_ptr.vmem [resolvable:$true] %s24_s10  ;;  %s40_s12 = int_to_ptr.vmem [resolvable:$true] %s39_s12 }
   0x3   :  { %s3331_s13 = scalar_lea.vmem %s25_s10, 64  ;;  %p3336_p1 = scmp.lt.s32.totalorder %s25_s10, %s25_s10 }
   0x4   :  { %p3332_p0 = scmp.ne.s32.totalorder %s25_s10, %s3331_s13  ;;  %p3337_p2 = scmp.lt.s32.totalorder %s3331_s13, %s3331_s13 }
   0x6   :  { %p3338_p3 = por %p3337_p2, %p3336_p1 }
   0x8   :  { %p3339_p4 = pnand %p3338_p3, %p3332_p0 }
   0xa   :  { %3342 = shalt.err (!%p3339_p4)
}
   0xb   :  { %27 = dma.hbm_to_vmem [thread:$0]  %s4026_s1, 64, %s25_s10, [#allocation4]  }
   0xc   :  { %s3351_s16 = scalar_lea.vmem %s40_s12, 512  ;;  %p3356_p6 = scmp.lt.s32.totalorder %s40_s12, %s40_s12 }
   0xd   :  { %p3352_p5 = scmp.ne.s32.totalorder %s40_s12, %s3351_s16  ;;  %p3357_p7 = scmp.lt.s32.totalorder %s3351_s16, %s3351_s16 }
   0xf   :  { %p3358_p8 = por %p3357_p7, %p3356_p6 }
  0x11   :  { %p3359_p9 = pnand %p3358_p8, %p3352_p5 }
  0x13   :  { %3362 = shalt.err (!%p3359_p9)
}
  0x14   :  { %s3369_s17 = smov 128   ;;  %s3370_s18 = smov 8  }
  0x15   :  { %45 = dma.hbm_to_vmem [thread:$0]  %s4030_s5, 512, %s40_s12, [#allocation6], %s3369_s17, %s3369_s17, %s3370_s18  }
  0x16   :  { %3363 = dma.done.wait [#allocation4], 64  }
  0x17   :  { %3364 = vsyncadd [#allocation4], 4294967232 }
  0x18   :  { %3365 = dma.done.wait [#allocation6], 512  }
  0x19   :  { %3366 = vsyncadd [#allocation6], 4294966784  ;;  %v3371_v0 = vmov 0.0   ;;  %vm3372_vm0 = vmmov 0   ;;  %vm79_vm1 = vcmask 1043456   ;;  %v3437_v1 = vld [vmem:[%s4027_s2 + $0x18] sm:$0xff] }
  0x1a   :  { %2861 = vmatprep.subr.mxu1 %v3371_v0  ;;  %2869 = vmatprep.mubr.msk.f32.mxu1 %vm3372_vm0, %v3371_v0  ;;  %v60_v2 = vld [vmem:[#allocation3] sm:$0xf]  ;;  %v58_v3 = vld [vmem:[%s4025_s0] sm:$0xff]  ;;  %vm72_vm2 = vcmask 31744   ;;  %v59_v5 = vld [vmem:[%s4025_s0 + $0x8] sm:$0xff]  ;;  %s3373_s10 = smov 64  }
  0x1b   :  { %2862 = vmatpush3.msra.mxu1 %v3437_v1  ;;  %2856 = vmatprep.subr.msk.mxu0 %vm79_vm1, %v60_v2  ;;  %v3446_v4 = vld [vmem:[%s4027_s2 + $0x10] sm:$0xff]  ;;  %v3455_v6 = vld [vmem:[%s4027_s2 + $0x8] sm:$0xff]  ;;  %v3464_v7 = vld [vmem:[%s4027_s2] sm:$0xff]  ;;  %vm298_vm3 = vcmask 1041409   ;;  %vm158_vm4 = vcmask 261120   ;;  %vm294_vm5 = vcmask 253952  }
  0x1c   :  { %2863 = vmatprep.subr.mxu1 %v3371_v0  ;;  %2857 = vmatpush3.msk.msra.mxu0 %vm79_vm1, %v60_v2  ;;  %v2705_v9 = vld [vmem:[%s4028_s3] ss:$0 sm:$0xff]  ;;  %s3374_s3 = smov 32   ;;  %vm442_vm6 = vcmask 254977   ;;  %vm590_vm7 = vcmask 256002   ;;  %vm739_vm8 = vcmask 257027  }
  0x1d   :  { %2858 = vmatprep.mubr.msk.f32.mxu0 %vm72_vm2, %v58_v3  ;;  %2864 = vmatpush3.msra.mxu1 %v3446_v4  ;;  %vm888_vm9 = vcmask 258052   ;;  %vm1037_vm10 = vcmask 259077   ;;  %vm1186_vm11 = vcmask 260102   ;;  %vm1335_vm12 = vcmask 261127  }
  0x1e   :  { %2859 = vmatmul.mubr.msk.f32.vlgmr.msra.gmra.mxu0 %vm72_vm2, %v59_v5  ;;  %2865 = vmatprep.subr.mxu1 %v3371_v0 }
  0x1f   :  { %2866 = vmatpush3.msra.mxu1 %v3455_v6  ;;  %2872 = vmatprep.subr.mxu0 %v3371_v0 }
  0x20   :  { %2867 = vmatprep.subr.mxu1 %v3371_v0  ;;  %2873 = vmatpush3.msra.mxu0 %v3437_v1 }
  0x21   :  { %2868 = vmatpush3.msra.mxu1 %v3464_v7  ;;  %2874 = vmatprep.subr.mxu0 %v3371_v0 }
  0x22   :  { %2870 = vmatmul.mubr.f32.vlgmr.msra.gmra.mxu1 %v3371_v0  ;;  %2875 = vmatpush3.msra.mxu0 %v3446_v4 }
  0x23   :  { %2876 = vmatprep.subr.mxu0 %v3371_v0  ;;  %2880 = vmatprep.mubr.msk.f32.mxu0 %vm3372_vm0, %v3371_v0 }
  0x24   :  { %2877 = vmatpush3.msra.mxu0 %v3455_v6  ;;  %2883 = vmatprep.subr.mxu1 %v3371_v0 }
  0x25   :  { %2878 = vmatprep.subr.mxu0 %v3371_v0  ;;  %2884 = vmatpush3.msra.mxu1 %v3437_v1 }
  0x26   :  { %2879 = vmatpush3.msra.mxu0 %v3464_v7  ;;  %2885 = vmatprep.subr.mxu1 %v3371_v0 }
  0x27   :  { %2886 = vmatpush3.msra.mxu1 %v3446_v4  ;;  %2891 = vmatprep.mubr.msk.f32.mxu1 %vm3372_vm0, %v3371_v0 }
  0x28   :  { %2887 = vmatprep.subr.mxu1 %v3371_v0  ;;  %2894 = vmatprep.subr.mxu0 %v3371_v0 }
  0x29   :  { %2888 = vmatpush3.msra.mxu1 %v3455_v6 }
  0x2a   :  { %2889 = vmatprep.subr.mxu1 %v3371_v0 }
  0x2b   :  { %2890 = vmatpush3.msra.mxu1 %v3464_v7 }
  0x2c   :  { %2905 = vmatprep.subr.mxu1 %v3371_v0 }
  0xde   :  { %v2860_v8 = vpop.f32.mrf.mxu0 }
  0xdf   :  { %v3495_v10 = vadd.f32 %v2860_v8, %v2705_v9 }
  0xe0   :  { %v149_v11 = vpop.f32.mrf.mxu0 }
  0xe1   :  { %v3497_v14 = vadd.f32 %v2705_v9, %v149_v11 }
  0xe2   :  { %v228_v12 = vpop.f32.mrf.mxu1 }
  0xe3   :  { %v233_v13 = vrot.slane %v228_v12, 1  ;;  %v236_v17 = vadd.f32 %v228_v12, %v3497_v14 }
  0xe4   :  { %v2871_v15 = vpop.f32.mrf.mxu1 }
  0xe5   :  { %v237_v16 = vadd.f32 %v233_v13, %v3495_v10  ;;  %v2709_v21 = vmul.f32 -1.442695, %v236_v17 }
  0xe7   :  { %3067 = vtanh.f32 %v237_v16  ;;  %v2710_v20 = vmul.f32 -1.442695, %v237_v16 }
  0xe8   :  { %3069 = vtanh.f32 %v236_v17 }
  0xe9   :  { %3071 = vpow2.f32 %v2710_v20 }
  0xea   :  { %3073 = vpow2.f32 %v2709_v21 }
  0xf4   :  { %v3068_v18 = vpop.eup %3067 }
  0xf5   :  { %258 = vrot.lane.b32.xlu0 %v3068_v18, %s3373_s10  ;;  %v3070_v19 = vpop.eup %3069 }
  0xf6   :  { %v3072_v22 = vpop.eup %3071 }
  0xf7   :  { %v245_v23 = vadd.f32 1.0, %v3072_v22  ;;  %v3074_v24 = vpop.eup %3073 }
  0xf8   :  { %v244_v25 = vadd.f32 1.0, %v3074_v24 }
  0xf9   :  { %256 = vrot.lane.b32.xlu0 %v3070_v19, %s3373_s10  ;;  %3075 = vrcp.f32 %v245_v23 }
  0xfa   :  { %3077 = vrcp.f32 %v244_v25 }
 0x106   :  { %v3076_v26 = vpop.eup %3075 }
 0x107   :  { %v3078_v29 = vpop.eup %3077  ;;  %v253_v32 = vmul.f32 0.0, %v3076_v26 }
 0x108   :  { %v252_v35 = vmul.f32 0.0, %v3078_v29 }
 0x167   :  { %v259_v27 = vpop.permute.xlu0 %258 }
 0x168   :  { %v263_v28 = vmul.f32 %v3076_v26, %v259_v27 }
 0x16a   :  { %268 = vrot.lane.b32.xlu1 %v263_v28, %s3374_s3 }
 0x16b   :  { %v257_v30 = vpop.permute.xlu0 %256 }
 0x16c   :  { %v262_v31 = vmul.f32 %v3078_v29, %v257_v30 }
 0x16e   :  { %266 = vrot.lane.b32.xlu1 %v262_v31, %s3374_s3 }
 0x1dc   :  { %v269_v33 = vpop.permute.xlu1 %268 }
 0x1dd   :  { %v273_v34 = vadd.f32 %v269_v33, %v253_v32 }
 0x1df   :  { %3079 = vtanh.f32 %v273_v34  ;;  %v397_v5 = vrot.slane %v273_v34, 7 }
 0x1e0   :  { %v267_v36 = vpop.permute.xlu1 %266 }
 0x1e1   :  { %v272_v37 = vadd.f32 %v267_v36, %v252_v35 }
 0x1e3   :  { %3081 = vtanh.f32 %v272_v37  ;;  %v396_v9 = vrot.slane %v272_v37, 7 }
 0x1ec   :  { %v3080_v38 = vpop.eup %3079 }
 0x1ed   :  { %280 = vrot.lane.b32.xlu0 %v3080_v38, %s3373_s10 }
 0x1f0   :  { %v3082_v39 = vpop.eup %3081 }
 0x1f1   :  { %278 = vrot.lane.b32.xlu1 %v3082_v39, %s3373_s10 }
 0x25f   :  { %v281_v40 = vpop.permute.xlu0 %280 }
 0x260   :  { %v3507_v41 = vmul.f32 %v3076_v26, %v281_v40 }
 0x262   :  { %v297_v43 = vrot.slane %v3507_v41, 7 }
 0x263   :  { %v279_v42 = vpop.permute.xlu1 %278 }
 0x264   :  { %v3510_v44 = vmul.f32 %v3078_v29, %v279_v42 }
 0x266   :  { %v299_v45 = vsel %vm298_vm3, %v297_v43, %v3510_v44 }
 0x267   :  { %300 = vrot.lane.b32.xlu0 %v299_v45, %s3374_s3 }
 0x2d9   :  { %v301_v46 = vpop.permute.xlu0 %300 }
 0x2da   :  { %2881 = vmatmul.mubr.msk.f32.vlgmr.msra.gmra.mxu0 %vm158_vm4, %v301_v46 }
 0x2db   :  { %2895 = vmatpush3.msra.mxu0 %v3437_v1  ;;  %2902 = vmatprep.mubr.msk.f32.mxu0 %vm3372_vm0, %v3371_v0 }
 0x2dc   :  { %2896 = vmatprep.subr.mxu0 %v3371_v0 }
 0x2dd   :  { %2897 = vmatpush3.msra.mxu0 %v3446_v4 }
 0x2de   :  { %2898 = vmatprep.subr.mxu0 %v3371_v0 }
 0x2df   :  { %2899 = vmatpush3.msra.mxu0 %v3455_v6 }
 0x2e0   :  { %2900 = vmatprep.subr.mxu0 %v3371_v0 }
 0x2e1   :  { %2901 = vmatpush3.msra.mxu0 %v3464_v7 }
 0x2e2   :  { %2916 = vmatprep.subr.mxu0 %v3371_v0 }
 0x39a   :  { %v370_v47 = vpop.f32.mrf.mxu0 }
 0x39b   :  { %v375_v48 = vrot.slane %v370_v47, 7  ;;  %v379_v49 = vadd.f32 %v370_v47, %v3495_v10 }
 0x39c   :  { %v2882_v50 = vpop.f32.mrf.mxu0 }
 0x39d   :  { %v378_v51 = vadd.f32 %v375_v48, %v3497_v14  ;;  %3083 = vtanh.f32 %v379_v49  ;;  %v2713_v54 = vmul.f32 -1.442695, %v379_v49 }
 0x39f   :  { %3085 = vtanh.f32 %v378_v51  ;;  %v2712_v55 = vmul.f32 -1.442695, %v378_v51 }
 0x3a0   :  { %3087 = vpow2.f32 %v2713_v54 }
 0x3a1   :  { %3089 = vpow2.f32 %v2712_v55 }
 0x3aa   :  { %v3084_v52 = vpop.eup %3083 }
 0x3ab   :  { %406 = vrot.lane.b32.xlu0 %v3084_v52, %s3373_s10 }
 0x3ac   :  { %v3086_v53 = vpop.eup %3085 }
 0x3ad   :  { %404 = vrot.lane.b32.xlu1 %v3086_v53, %s3373_s10  ;;  %v3088_v56 = vpop.eup %3087 }
 0x3ae   :  { %v3090_v57 = vpop.eup %3089  ;;  %v387_v58 = vadd.f32 1.0, %v3088_v56 }
 0x3af   :  { %v386_v59 = vadd.f32 1.0, %v3090_v57 }
 0x3b0   :  { %3091 = vrcp.f32 %v387_v58 }
 0x3b1   :  { %3093 = vrcp.f32 %v386_v59 }
 0x3bd   :  { %v3092_v60 = vpop.eup %3091 }
 0x3be   :  { %v3094_v63 = vpop.eup %3093  ;;  %v401_v8 = vmul.f32 %v3092_v60, %v397_v5 }
 0x3bf   :  { %v400_v13 = vmul.f32 %v3094_v63, %v396_v9 }
 0x41d   :  { %v407_v61 = vpop.permute.xlu0 %406 }
 0x41e   :  { %v411_v62 = vmul.f32 %v3092_v60, %v407_v61 }
 0x41f   :  { %v405_v2 = vpop.permute.xlu1 %404 }
 0x420   :  { %416 = vrot.lane.b32.xlu0 %v411_v62, %s3374_s3  ;;  %v410_v3 = vmul.f32 %v3094_v63, %v405_v2 }
 0x422   :  { %414 = vrot.lane.b32.xlu1 %v410_v3, %s3374_s3 }
 0x492   :  { %v417_v11 = vpop.permute.xlu0 %416 }
 0x493   :  { %v421_v12 = vadd.f32 %v417_v11, %v401_v8 }
 0x494   :  { %v415_v15 = vpop.permute.xlu1 %414 }
 0x495   :  { %3095 = vtanh.f32 %v421_v12  ;;  %v420_v16 = vadd.f32 %v415_v15, %v400_v13  ;;  %v545_v49 = vrot.slane %v421_v12, 7 }
 0x497   :  { %3097 = vtanh.f32 %v420_v16  ;;  %v544_v48 = vrot.slane %v420_v16, 7 }
 0x4a2   :  { %v3096_v17 = vpop.eup %3095 }
 0x4a3   :  { %428 = vrot.lane.b32.xlu0 %v3096_v17, %s3373_s10 }
 0x4a4   :  { %v3098_v18 = vpop.eup %3097 }
 0x4a5   :  { %426 = vrot.lane.b32.xlu1 %v3098_v18, %s3373_s10 }
 0x515   :  { %v429_v19 = vpop.permute.xlu0 %428 }
 0x516   :  { %v3536_v22 = vmul.f32 %v3092_v60, %v429_v19 }
 0x517   :  { %v427_v20 = vpop.permute.xlu1 %426 }
 0x518   :  { %v3534_v21 = vmul.f32 %v3094_v63, %v427_v20 }
 0x51a   :  { %v445_v23 = vrot.slane %v3534_v21, 1 }
 0x51c   :  { %v446_v24 = vsel %vm298_vm3, %v3536_v22, %v445_v23 }
 0x51d   :  { %447 = vrot.lane.b32.xlu1 %v446_v24, %s3374_s3 }
 0x58f   :  { %v448_v25 = vpop.permute.xlu1 %447 }
 0x590   :  { %2892 = vmatmul.mubr.msk.f32.vlgmr.msra.gmra.mxu1 %vm158_vm4, %v448_v25 }
 0x591   :  { %2906 = vmatpush3.msra.mxu1 %v3437_v1  ;;  %2913 = vmatprep.mubr.msk.f32.mxu1 %vm3372_vm0, %v3371_v0 }
 0x592   :  { %2907 = vmatprep.subr.mxu1 %v3371_v0 }
 0x593   :  { %2908 = vmatpush3.msra.mxu1 %v3446_v4 }
 0x594   :  { %2909 = vmatprep.subr.mxu1 %v3371_v0 }
 0x595   :  { %2910 = vmatpush3.msra.mxu1 %v3455_v6 }
 0x596   :  { %2911 = vmatprep.subr.mxu1 %v3371_v0 }
 0x597   :  { %2912 = vmatpush3.msra.mxu1 %v3464_v7 }
 0x598   :  { %2927 = vmatprep.subr.mxu1 %v3371_v0 }
 0x650   :  { %v517_v26 = vpop.f32.mrf.mxu1 }
 0x651   :  { %v522_v27 = vrot.slane %v517_v26, 6  ;;  %v523_v28 = vrot.slane %v517_v26, 7 }
 0x652   :  { %v2893_v29 = vpop.f32.mrf.mxu1 }
 0x653   :  { %v526_v30 = vadd.f32 %v522_v27, %v3497_v14  ;;  %v527_v31 = vadd.f32 %v523_v28, %v3495_v10 }
 0x655   :  { %3099 = vtanh.f32 %v526_v30  ;;  %v2715_v34 = vmul.f32 -1.442695, %v526_v30  ;;  %v2716_v35 = vmul.f32 -1.442695, %v527_v31 }
 0x656   :  { %3101 = vtanh.f32 %v527_v31 }
 0x657   :  { %3103 = vpow2.f32 %v2715_v34 }
 0x658   :  { %3105 = vpow2.f32 %v2716_v35 }
 0x662   :  { %v3100_v32 = vpop.eup %3099 }
 0x663   :  { %v3102_v33 = vpop.eup %3101  ;;  %552 = vrot.lane.b32.xlu0 %v3100_v32, %s3373_s10 }
 0x664   :  { %554 = vrot.lane.b32.xlu1 %v3102_v33, %s3373_s10  ;;  %v3104_v36 = vpop.eup %3103 }
 0x665   :  { %v3106_v37 = vpop.eup %3105  ;;  %v534_v38 = vadd.f32 1.0, %v3104_v36 }
 0x666   :  { %v535_v39 = vadd.f32 1.0, %v3106_v37 }
 0x667   :  { %3107 = vrcp.f32 %v534_v38 }
 0x668   :  { %3109 = vrcp.f32 %v535_v39 }
 0x674   :  { %v3108_v40 = vpop.eup %3107 }
 0x675   :  { %v3110_v43 = vpop.eup %3109  ;;  %v548_v50 = vmul.f32 %v3108_v40, %v544_v48 }
 0x676   :  { %v549_v51 = vmul.f32 %v3110_v43, %v545_v49 }
 0x6d5   :  { %v553_v42 = vpop.permute.xlu0 %552 }
 0x6d6   :  { %v555_v45 = vpop.permute.xlu1 %554  ;;  %v558_v46 = vmul.f32 %v3108_v40, %v553_v42 }
 0x6d7   :  { %v559_v47 = vmul.f32 %v3110_v43, %v555_v45 }
 0x6d8   :  { %562 = vrot.lane.b32.xlu0 %v558_v46, %s3374_s3 }
 0x6d9   :  { %564 = vrot.lane.b32.xlu1 %v559_v47, %s3374_s3 }
 0x74a   :  { %v563_v52 = vpop.permute.xlu0 %562 }
 0x74b   :  { %v565_v53 = vpop.permute.xlu1 %564  ;;  %v568_v54 = vadd.f32 %v563_v52, %v548_v50 }
 0x74c   :  { %v569_v55 = vadd.f32 %v565_v53, %v549_v51 }
 0x74d   :  { %3111 = vtanh.f32 %v568_v54  ;;  %v693_v31 = vrot.slane %v568_v54, 7 }
 0x74e   :  { %3113 = vtanh.f32 %v569_v55  ;;  %v694_v32 = vrot.slane %v569_v55, 7 }
 0x75a   :  { %v3112_v56 = vpop.eup %3111 }
 0x75b   :  { %v3114_v57 = vpop.eup %3113  ;;  %574 = vrot.lane.b32.xlu0 %v3112_v56, %s3373_s10 }
 0x75c   :  { %576 = vrot.lane.b32.xlu1 %v3114_v57, %s3373_s10 }
 0x7cd   :  { %v575_v58 = vpop.permute.xlu0 %574 }
 0x7ce   :  { %v577_v59 = vpop.permute.xlu1 %576  ;;  %v3561_v60 = vmul.f32 %v3108_v40, %v575_v58 }
 0x7cf   :  { %v3563_v61 = vmul.f32 %v3110_v43, %v577_v59 }
 0x7d0   :  { %v593_v62 = vrot.slane %v3561_v60, 2 }
 0x7d1   :  { %v594_v63 = vrot.slane %v3563_v61, 1 }
 0x7d3   :  { %v595_v2 = vsel %vm298_vm3, %v594_v63, %v593_v62 }
 0x7d4   :  { %596 = vrot.lane.b32.xlu0 %v595_v2, %s3374_s3 }
 0x846   :  { %v597_v3 = vpop.permute.xlu0 %596 }
 0x847   :  { %2903 = vmatmul.mubr.msk.f32.vlgmr.msra.gmra.mxu0 %vm158_vm4, %v597_v3 }
 0x848   :  { %2917 = vmatpush3.msra.mxu0 %v3437_v1  ;;  %2924 = vmatprep.mubr.msk.f32.mxu0 %vm3372_vm0, %v3371_v0 }
 0x849   :  { %2918 = vmatprep.subr.mxu0 %v3371_v0 }
 0x84a   :  { %2919 = vmatpush3.msra.mxu0 %v3446_v4 }
 0x84b   :  { %2920 = vmatprep.subr.mxu0 %v3371_v0 }
 0x84c   :  { %2921 = vmatpush3.msra.mxu0 %v3455_v6 }
 0x84d   :  { %2922 = vmatprep.subr.mxu0 %v3371_v0 }
 0x84e   :  { %2923 = vmatpush3.msra.mxu0 %v3464_v7 }
 0x84f   :  { %2938 = vmatprep.subr.mxu0 %v3371_v0 }
 0x907   :  { %v666_v5 = vpop.f32.mrf.mxu0 }
 0x908   :  { %v671_v8 = vrot.slane %v666_v5, 5  ;;  %v672_v9 = vrot.slane %v666_v5, 6 }
 0x909   :  { %v2904_v11 = vpop.f32.mrf.mxu0 }
 0x90a   :  { %v675_v12 = vadd.f32 %v671_v8, %v3497_v14  ;;  %v676_v13 = vadd.f32 %v672_v9, %v3495_v10 }
 0x90c   :  { %3115 = vtanh.f32 %v675_v12  ;;  %v2718_v17 = vmul.f32 -1.442695, %v675_v12  ;;  %v2719_v18 = vmul.f32 -1.442695, %v676_v13 }
 0x90d   :  { %3117 = vtanh.f32 %v676_v13 }
 0x90e   :  { %3119 = vpow2.f32 %v2718_v17 }
 0x90f   :  { %3121 = vpow2.f32 %v2719_v18 }
 0x919   :  { %v3116_v15 = vpop.eup %3115 }
 0x91a   :  { %v3118_v16 = vpop.eup %3117  ;;  %701 = vrot.lane.b32.xlu1 %v3116_v15, %s3373_s10 }
 0x91b   :  { %703 = vrot.lane.b32.xlu0 %v3118_v16, %s3373_s10  ;;  %v3120_v19 = vpop.eup %3119 }
 0x91c   :  { %v3122_v20 = vpop.eup %3121  ;;  %v683_v23 = vadd.f32 1.0, %v3120_v19 }
 0x91d   :  { %v684_v24 = vadd.f32 1.0, %v3122_v20 }
 0x91e   :  { %3123 = vrcp.f32 %v683_v23 }
 0x91f   :  { %3125 = vrcp.f32 %v684_v24 }
 0x92b   :  { %v3124_v25 = vpop.eup %3123 }
 0x92c   :  { %v3126_v27 = vpop.eup %3125  ;;  %v697_v33 = vmul.f32 %v3124_v25, %v693_v31 }
 0x92d   :  { %v698_v34 = vmul.f32 %v3126_v27, %v694_v32 }
 0x98c   :  { %v702_v26 = vpop.permute.xlu1 %701 }
 0x98d   :  { %v704_v28 = vpop.permute.xlu0 %703  ;;  %v707_v29 = vmul.f32 %v3124_v25, %v702_v26 }
 0x98e   :  { %v708_v30 = vmul.f32 %v3126_v27, %v704_v28 }
 0x98f   :  { %711 = vrot.lane.b32.xlu1 %v707_v29, %s3374_s3 }
 0x990   :  { %713 = vrot.lane.b32.xlu0 %v708_v30, %s3374_s3 }
 0xa01   :  { %v712_v35 = vpop.permute.xlu1 %711 }
 0xa02   :  { %v714_v36 = vpop.permute.xlu0 %713  ;;  %v717_v37 = vadd.f32 %v712_v35, %v697_v33 }
 0xa03   :  { %v718_v38 = vadd.f32 %v714_v36, %v698_v34 }
 0xa04   :  { %3127 = vtanh.f32 %v717_v37  ;;  %v842_v16 = vrot.slane %v717_v37, 7 }
 0xa05   :  { %3129 = vtanh.f32 %v718_v38  ;;  %v843_v17 = vrot.slane %v718_v38, 7 }
 0xa11   :  { %v3128_v39 = vpop.eup %3127 }
 0xa12   :  { %v3130_v40 = vpop.eup %3129  ;;  %723 = vrot.lane.b32.xlu1 %v3128_v39, %s3373_s10 }
 0xa13   :  { %725 = vrot.lane.b32.xlu0 %v3130_v40, %s3373_s10 }
 0xa84   :  { %v724_v42 = vpop.permute.xlu1 %723 }
 0xa85   :  { %v726_v43 = vpop.permute.xlu0 %725  ;;  %v3588_v45 = vmul.f32 %v3124_v25, %v724_v42 }
 0xa86   :  { %v3590_v46 = vmul.f32 %v3126_v27, %v726_v43 }
 0xa87   :  { %v742_v47 = vrot.slane %v3588_v45, 3 }
 0xa88   :  { %v743_v48 = vrot.slane %v3590_v46, 2 }
 0xa8a   :  { %v744_v49 = vsel %vm298_vm3, %v743_v48, %v742_v47 }
 0xa8b   :  { %745 = vrot.lane.b32.xlu1 %v744_v49, %s3374_s3 }
 0xafd   :  { %v746_v50 = vpop.permute.xlu1 %745 }
 0xafe   :  { %2914 = vmatmul.mubr.msk.f32.vlgmr.msra.gmra.mxu1 %vm158_vm4, %v746_v50 }
 0xaff   :  { %2928 = vmatpush3.msra.mxu1 %v3437_v1  ;;  %2935 = vmatprep.mubr.msk.f32.mxu1 %vm3372_vm0, %v3371_v0 }
 0xb00   :  { %2929 = vmatprep.subr.mxu1 %v3371_v0 }
 0xb01   :  { %2930 = vmatpush3.msra.mxu1 %v3446_v4 }
 0xb02   :  { %2931 = vmatprep.subr.mxu1 %v3371_v0 }
 0xb03   :  { %2932 = vmatpush3.msra.mxu1 %v3455_v6 }
 0xb04   :  { %2933 = vmatprep.subr.mxu1 %v3371_v0 }
 0xb05   :  { %2934 = vmatpush3.msra.mxu1 %v3464_v7 }
 0xbbe   :  { %v815_v51 = vpop.f32.mrf.mxu1 }
 0xbbf   :  { %v820_v52 = vrot.slane %v815_v51, 4  ;;  %v821_v53 = vrot.slane %v815_v51, 5 }
 0xbc0   :  { %v2915_v54 = vpop.f32.mrf.mxu1 }
 0xbc1   :  { %v824_v55 = vadd.f32 %v820_v52, %v3497_v14  ;;  %v825_v56 = vadd.f32 %v821_v53, %v3495_v10 }
 0xbc3   :  { %3131 = vtanh.f32 %v824_v55  ;;  %v2721_v59 = vmul.f32 -1.442695, %v824_v55  ;;  %v2722_v62 = vmul.f32 -1.442695, %v825_v56 }
 0xbc4   :  { %3133 = vtanh.f32 %v825_v56 }
 0xbc5   :  { %3135 = vpow2.f32 %v2721_v59 }
 0xbc6   :  { %3137 = vpow2.f32 %v2722_v62 }
 0xbd0   :  { %v3132_v57 = vpop.eup %3131 }
 0xbd1   :  { %v3134_v58 = vpop.eup %3133  ;;  %850 = vrot.lane.b32.xlu0 %v3132_v57, %s3373_s10 }
 0xbd2   :  { %852 = vrot.lane.b32.xlu1 %v3134_v58, %s3373_s10  ;;  %v3136_v63 = vpop.eup %3135 }
 0xbd3   :  { %v3138_v2 = vpop.eup %3137  ;;  %v832_v3 = vadd.f32 1.0, %v3136_v63 }
 0xbd4   :  { %v833_v5 = vadd.f32 1.0, %v3138_v2 }
 0xbd5   :  { %3139 = vrcp.f32 %v832_v3 }
 0xbd6   :  { %3141 = vrcp.f32 %v833_v5 }
 0xbe2   :  { %v3140_v8 = vpop.eup %3139 }
 0xbe3   :  { %v3142_v11 = vpop.eup %3141  ;;  %v846_v18 = vmul.f32 %v3140_v8, %v842_v16 }
 0xbe4   :  { %v847_v19 = vmul.f32 %v3142_v11, %v843_v17 }
 0xc43   :  { %v851_v9 = vpop.permute.xlu0 %850 }
 0xc44   :  { %v853_v12 = vpop.permute.xlu1 %852  ;;  %v856_v13 = vmul.f32 %v3140_v8, %v851_v9 }
 0xc45   :  { %v857_v15 = vmul.f32 %v3142_v11, %v853_v12 }
 0xc46   :  { %860 = vrot.lane.b32.xlu0 %v856_v13, %s3374_s3 }
 0xc47   :  { %862 = vrot.lane.b32.xlu1 %v857_v15, %s3374_s3 }
 0xcb8   :  { %v861_v20 = vpop.permute.xlu0 %860 }
 0xcb9   :  { %v863_v23 = vpop.permute.xlu1 %862  ;;  %v866_v24 = vadd.f32 %v861_v20, %v846_v18 }
 0xcba   :  { %v867_v25 = vadd.f32 %v863_v23, %v847_v19 }
 0xcbb   :  { %3143 = vtanh.f32 %v866_v24  ;;  %v991_v56 = vrot.slane %v866_v24, 7 }
 0xcbc   :  { %3145 = vtanh.f32 %v867_v25  ;;  %v992_v57 = vrot.slane %v867_v25, 7 }
 0xcc8   :  { %v3144_v26 = vpop.eup %3143 }
 0xcc9   :  { %v3146_v27 = vpop.eup %3145  ;;  %872 = vrot.lane.b32.xlu0 %v3144_v26, %s3373_s10 }
 0xcca   :  { %874 = vrot.lane.b32.xlu1 %v3146_v27, %s3373_s10 }
 0xd3b   :  { %v873_v28 = vpop.permute.xlu0 %872 }
 0xd3c   :  { %v875_v29 = vpop.permute.xlu1 %874  ;;  %v3614_v30 = vmul.f32 %v3140_v8, %v873_v28 }
 0xd3d   :  { %v3616_v31 = vmul.f32 %v3142_v11, %v875_v29 }
 0xd3e   :  { %v891_v32 = vrot.slane %v3614_v30, 4 }
 0xd3f   :  { %v892_v33 = vrot.slane %v3616_v31, 3 }
 0xd41   :  { %v893_v34 = vsel %vm298_vm3, %v892_v33, %v891_v32 }
 0xd42   :  { %894 = vrot.lane.b32.xlu0 %v893_v34, %s3374_s3 }
 0xdb4   :  { %v895_v35 = vpop.permute.xlu0 %894 }
 0xdb5   :  { %2925 = vmatmul.mubr.msk.f32.vlgmr.msra.gmra.mxu0 %vm158_vm4, %v895_v35 }
 0xdb6   :  { %2939 = vmatpush3.msra.mxu0 %v3437_v1  ;;  %2946 = vmatprep.mubr.msk.f32.mxu0 %vm3372_vm0, %v3371_v0 }
 0xdb7   :  { %2940 = vmatprep.subr.mxu0 %v3371_v0 }
 0xdb8   :  { %2941 = vmatpush3.msra.mxu0 %v3446_v4 }
 0xdb9   :  { %2942 = vmatprep.subr.mxu0 %v3371_v0 }
 0xdba   :  { %2943 = vmatpush3.msra.mxu0 %v3455_v6 }
 0xdbb   :  { %2944 = vmatprep.subr.mxu0 %v3371_v0 }
 0xdbc   :  { %2945 = vmatpush3.msra.mxu0 %v3464_v7 }
 0xdbd   :  { %2960 = vmatprep.subr.mxu0 %v3371_v0 }
 0xe75   :  { %v964_v36 = vpop.f32.mrf.mxu0 }
 0xe76   :  { %v969_v37 = vrot.slane %v964_v36, 3  ;;  %v970_v1 = vrot.slane %v964_v36, 4 }
 0xe77   :  { %v2926_v38 = vpop.f32.mrf.mxu0 }
 0xe78   :  { %v973_v39 = vadd.f32 %v969_v37, %v3497_v14  ;;  %v974_v40 = vadd.f32 %v970_v1, %v3495_v10 }
 0xe7a   :  { %3147 = vtanh.f32 %v973_v39  ;;  %v2724_v6 = vmul.f32 -1.442695, %v973_v39  ;;  %v2725_v7 = vmul.f32 -1.442695, %v974_v40 }
 0xe7b   :  { %3149 = vtanh.f32 %v974_v40 }
 0xe7c   :  { %3151 = vpow2.f32 %v2724_v6 }
 0xe7d   :  { %3153 = vpow2.f32 %v2725_v7 }
 0xe87   :  { %v3148_v4 = vpop.eup %3147 }
 0xe88   :  { %v3150_v42 = vpop.eup %3149  ;;  %999 = vrot.lane.b32.xlu1 %v3148_v4, %s3373_s10 }
 0xe89   :  { %1001 = vrot.lane.b32.xlu0 %v3150_v42, %s3373_s10  ;;  %v3152_v43 = vpop.eup %3151 }
 0xe8a   :  { %v3154_v47 = vpop.eup %3153  ;;  %v981_v48 = vadd.f32 1.0, %v3152_v43 }
 0xe8b   :  { %v982_v49 = vadd.f32 1.0, %v3154_v47 }
 0xe8c   :  { %3155 = vrcp.f32 %v981_v48 }
 0xe8d   :  { %3157 = vrcp.f32 %v982_v49 }
 0xe99   :  { %v3156_v50 = vpop.eup %3155 }
 0xe9a   :  { %v3158_v52 = vpop.eup %3157  ;;  %v995_v58 = vmul.f32 %v3156_v50, %v991_v56 }
 0xe9b   :  { %v996_v59 = vmul.f32 %v3158_v52, %v992_v57 }
 0xefa   :  { %v1000_v51 = vpop.permute.xlu1 %999 }
 0xefb   :  { %v1002_v53 = vpop.permute.xlu0 %1001  ;;  %v1005_v54 = vmul.f32 %v3156_v50, %v1000_v51 }
 0xefc   :  { %v1006_v55 = vmul.f32 %v3158_v52, %v1002_v53 }
 0xefd   :  { %1009 = vrot.lane.b32.xlu1 %v1005_v54, %s3374_s3 }
 0xefe   :  { %1011 = vrot.lane.b32.xlu0 %v1006_v55, %s3374_s3 }
 0xf6f   :  { %v1010_v62 = vpop.permute.xlu1 %1009 }
 0xf70   :  { %v1012_v63 = vpop.permute.xlu0 %1011  ;;  %v1015_v2 = vadd.f32 %v1010_v62, %v995_v58 }
 0xf71   :  { %v1016_v3 = vadd.f32 %v1012_v63, %v996_v59 }
 0xf72   :  { %3159 = vtanh.f32 %v1015_v2  ;;  %v1140_v42 = vrot.slane %v1015_v2, 7 }
 0xf73   :  { %3161 = vtanh.f32 %v1016_v3  ;;  %v1141_v6 = vrot.slane %v1016_v3, 7 }
 0xf7f   :  { %v3160_v5 = vpop.eup %3159 }
 0xf80   :  { %v3162_v8 = vpop.eup %3161  ;;  %1021 = vrot.lane.b32.xlu1 %v3160_v5, %s3373_s10 }
 0xf81   :  { %1023 = vrot.lane.b32.xlu0 %v3162_v8, %s3373_s10 }
 0xff2   :  { %v1022_v9 = vpop.permute.xlu1 %1021 }
 0xff3   :  { %v1024_v11 = vpop.permute.xlu0 %1023  ;;  %v3641_v12 = vmul.f32 %v3156_v50, %v1022_v9 }
 0xff4   :  { %v3643_v13 = vmul.f32 %v3158_v52, %v1024_v11 }
 0xff5   :  { %v1040_v15 = vrot.slane %v3641_v12, 5 }
 0xff6   :  { %v1041_v16 = vrot.slane %v3643_v13, 4 }
 0xff8   :  { %v1042_v17 = vsel %vm298_vm3, %v1041_v16, %v1040_v15 }
 0xff9   :  { %1043 = vrot.lane.b32.xlu1 %v1042_v17, %s3374_s3 }
0x106b   :  { %v1044_v18 = vpop.permute.xlu1 %1043 }
0x106c   :  { %2936 = vmatmul.mubr.msk.f32.vlgmr.msra.gmra.mxu1 %vm158_vm4, %v1044_v18 }
0x112c   :  { %v1113_v19 = vpop.f32.mrf.mxu1 }
0x112d   :  { %v1118_v20 = vrot.slane %v1113_v19, 2  ;;  %v1119_v23 = vrot.slane %v1113_v19, 3 }
0x112e   :  { %v2937_v24 = vpop.f32.mrf.mxu1 }
0x112f   :  { %v1122_v25 = vadd.f32 %v1118_v20, %v3497_v14  ;;  %v1123_v26 = vadd.f32 %v1119_v23, %v3495_v10 }
0x1131   :  { %3163 = vtanh.f32 %v1122_v25  ;;  %v2727_v29 = vmul.f32 -1.442695, %v1122_v25  ;;  %v2728_v32 = vmul.f32 -1.442695, %v1123_v26 }
0x1132   :  { %3165 = vtanh.f32 %v1123_v26 }
0x1133   :  { %3167 = vpow2.f32 %v2727_v29 }
0x1134   :  { %3169 = vpow2.f32 %v2728_v32 }
0x113e   :  { %v3164_v27 = vpop.eup %3163 }
0x113f   :  { %v3166_v28 = vpop.eup %3165  ;;  %1148 = vrot.lane.b32.xlu0 %v3164_v27, %s3373_s10 }
0x1140   :  { %1150 = vrot.lane.b32.xlu1 %v3166_v28, %s3373_s10  ;;  %v3168_v33 = vpop.eup %3167 }
0x1141   :  { %v3170_v34 = vpop.eup %3169  ;;  %v1130_v35 = vadd.f32 1.0, %v3168_v33 }
0x1142   :  { %v1131_v36 = vadd.f32 1.0, %v3170_v34 }
0x1143   :  { %3171 = vrcp.f32 %v1130_v35 }
0x1144   :  { %3173 = vrcp.f32 %v1131_v36 }
0x1150   :  { %v3172_v37 = vpop.eup %3171 }
0x1151   :  { %v3174_v38 = vpop.eup %3173  ;;  %v1144_v7 = vmul.f32 %v3172_v37, %v1140_v42 }
0x1152   :  { %v1145_v43 = vmul.f32 %v3174_v38, %v1141_v6 }
0x11b1   :  { %v1149_v1 = vpop.permute.xlu0 %1148 }
0x11b2   :  { %v1151_v39 = vpop.permute.xlu1 %1150  ;;  %v1154_v40 = vmul.f32 %v3172_v37, %v1149_v1 }
0x11b3   :  { %v1155_v4 = vmul.f32 %v3174_v38, %v1151_v39 }
0x11b4   :  { %1158 = vrot.lane.b32.xlu0 %v1154_v40, %s3374_s3 }
0x11b5   :  { %1160 = vrot.lane.b32.xlu1 %v1155_v4, %s3374_s3 }
0x1226   :  { %v1159_v47 = vpop.permute.xlu0 %1158 }
0x1227   :  { %v1161_v48 = vpop.permute.xlu1 %1160  ;;  %v1164_v49 = vadd.f32 %v1159_v47, %v1144_v7 }
0x1228   :  { %v1165_v50 = vadd.f32 %v1161_v48, %v1145_v43 }
0x1229   :  { %3175 = vtanh.f32 %v1164_v49  ;;  %v1289_v28 = vrot.slane %v1164_v49, 7 }
0x122a   :  { %3177 = vtanh.f32 %v1165_v50  ;;  %v1290_v29 = vrot.slane %v1165_v50, 7 }
0x1236   :  { %v3176_v51 = vpop.eup %3175 }
0x1237   :  { %v3178_v52 = vpop.eup %3177  ;;  %1170 = vrot.lane.b32.xlu0 %v3176_v51, %s3373_s10 }
0x1238   :  { %1172 = vrot.lane.b32.xlu1 %v3178_v52, %s3373_s10 }
0x12a9   :  { %v1171_v53 = vpop.permute.xlu0 %1170 }
0x12aa   :  { %v1173_v54 = vpop.permute.xlu1 %1172  ;;  %v1176_v55 = vmul.f32 %v3172_v37, %v1171_v53 }
0x12ab   :  { %v3658_v56 = vmul.f32 %v3174_v38, %v1173_v54 }
0x12ac   :  { %v1189_v57 = vrot.slane %v1176_v55, 6 }
0x12ad   :  { %v1190_v58 = vrot.slane %v3658_v56, 5 }
0x12af   :  { %v1191_v59 = vsel %vm298_vm3, %v1190_v58, %v1189_v57 }
0x12b0   :  { %1192 = vrot.lane.b32.xlu0 %v1191_v59, %s3374_s3 }
0x1322   :  { %v1193_v62 = vpop.permute.xlu0 %1192 }
0x1323   :  { %2947 = vmatmul.mubr.msk.f32.vlgmr.msra.gmra.mxu0 %vm158_vm4, %v1193_v62  ;;  %v2732_v62 = vld [vmem:[%s4031_s6] ss:$0 sm:$0xff] }
0x1324   :  { %2968 = vmatprep.mubr.msk.f32.mxu0 %vm3372_vm0, %v3371_v0 }
0x13e3   :  { %v1262_v63 = vpop.f32.mrf.mxu0 }
0x13e4   :  { %v1267_v2 = vrot.slane %v1262_v63, 1  ;;  %v1268_v3 = vrot.slane %v1262_v63, 2 }
0x13e5   :  { %v2948_v5 = vpop.f32.mrf.mxu0 }
0x13e6   :  { %v1271_v8 = vadd.f32 %v1267_v2, %v3497_v14  ;;  %v1272_v9 = vadd.f32 %v1268_v3, %v3495_v10 }
0x13e8   :  { %3179 = vtanh.f32 %v1271_v8  ;;  %v2730_v16 = vmul.f32 -1.442695, %v1271_v8  ;;  %v2731_v17 = vmul.f32 -1.442695, %v1272_v9 }
0x13e9   :  { %3181 = vtanh.f32 %v1272_v9 }
0x13ea   :  { %3183 = vpow2.f32 %v2730_v16 }
0x13eb   :  { %3185 = vpow2.f32 %v2731_v17 }
0x13f5   :  { %v3180_v11 = vpop.eup %3179 }
0x13f6   :  { %v3182_v15 = vpop.eup %3181  ;;  %1297 = vrot.lane.b32.xlu1 %v3180_v11, %s3373_s10 }
0x13f7   :  { %1299 = vrot.lane.b32.xlu0 %v3182_v15, %s3373_s10  ;;  %v3184_v18 = vpop.eup %3183 }
0x13f8   :  { %v3186_v19 = vpop.eup %3185  ;;  %v1279_v20 = vadd.f32 1.0, %v3184_v18 }
0x13f9   :  { %v1280_v23 = vadd.f32 1.0, %v3186_v19 }
0x13fa   :  { %3187 = vrcp.f32 %v1279_v20 }
0x13fb   :  { %3189 = vrcp.f32 %v1280_v23 }
0x1407   :  { %v3188_v14 = vpop.eup %3187 }
0x1408   :  { %v3670_v24 = vpop.eup %3189  ;;  %v1293_v32 = vmul.f32 %v3188_v14, %v1289_v28 }
0x1409   :  { %v1294_v33 = vmul.f32 %v3670_v24, %v1290_v29 }
0x1468   :  { %v1298_v10 = vpop.permute.xlu1 %1297 }
0x1469   :  { %v1300_v25 = vpop.permute.xlu0 %1299  ;;  %v1303_v26 = vmul.f32 %v3188_v14, %v1298_v10 }
0x146a   :  { %v1304_v27 = vmul.f32 %v3670_v24, %v1300_v25 }
0x146b   :  { %1307 = vrot.lane.b32.xlu1 %v1303_v26, %s3374_s3 }
0x146c   :  { %1309 = vrot.lane.b32.xlu0 %v1304_v27, %s3374_s3 }
0x14dd   :  { %v1308_v34 = vpop.permute.xlu1 %1307 }
0x14de   :  { %v1310_v35 = vpop.permute.xlu0 %1309  ;;  %v1313_v36 = vadd.f32 %v1308_v34, %v1293_v32 }
0x14df   :  { %v1314_v37 = vadd.f32 %v1310_v35, %v1294_v33 }
0x14e0   :  { %3191 = vtanh.f32 %v1313_v36 }
0x14e1   :  { %3193 = vtanh.f32 %v1314_v37 }
0x14ed   :  { %v3192_v1 = vpop.eup %3191 }
0x14ee   :  { %v3194_v38 = vpop.eup %3193  ;;  %1319 = vrot.lane.b32.xlu1 %v3192_v1, %s3373_s10 }
0x14ef   :  { %1321 = vrot.lane.b32.xlu0 %v3194_v38, %s3373_s10 }
0x14f2   :  { %288 = vrot.lane.b32.xlu1 %v3510_v44, %s3374_s3  ;;  %v3705_v44 = vld [vmem:[#allocation5 + $0x18] sm:$0xff] }
0x14f3   :  { %436 = vrot.lane.b32.xlu0 %v3534_v21, %s3374_s3  ;;  %2961 = vmatpush3.msra.mxu0 %v3705_v44  ;;  %v3712_v21 = vld [vmem:[#allocation5 + $0x10] sm:$0xff] }
0x14f4   :  { %2962 = vmatprep.subr.mxu0 %v3371_v0 }
0x14f5   :  { %2963 = vmatpush3.msra.mxu0 %v3712_v21 }
0x14f6   :  { %584 = vrot.lane.b32.xlu1 %v3561_v60, %s3374_s3  ;;  %v3718_v60 = vld [vmem:[#allocation5 + $0x8] sm:$0xff]  ;;  %2964 = vmatprep.subr.mxu0 %v3371_v0 }
0x14f7   :  { %733 = vrot.lane.b32.xlu0 %v3588_v45, %s3374_s3  ;;  %2965 = vmatpush3.msra.mxu0 %v3718_v60  ;;  %v3726_v45 = vld [vmem:[#allocation5] sm:$0xff] }
0x14f8   :  { %2966 = vmatprep.subr.mxu0 %v3371_v0 }
0x14f9   :  { %2967 = vmatpush3.msra.mxu0 %v3726_v45 }
0x14fa   :  { %882 = vrot.lane.b32.xlu1 %v3614_v30, %s3374_s3  ;;  %2969 = vmatmul.mubr.f32.vlgmr.msra.gmra.mxu0 %v3371_v0 }
0x14fb   :  { %1031 = vrot.lane.b32.xlu0 %v3641_v12, %s3374_s3  ;;  %2982 = vmatprep.subr.mxu0 %v3371_v0 }
0x14fc   :  { %2983 = vmatpush3.msra.mxu0 %v3705_v44  ;;  %2990 = vmatprep.mubr.msk.f32.mxu0 %vm3372_vm0, %v3371_v0 }
0x14fd   :  { %2984 = vmatprep.subr.mxu0 %v3371_v0 }
0x14fe   :  { %1180 = vrot.lane.b32.xlu1 %v1176_v55, %s3374_s3  ;;  %2985 = vmatpush3.msra.mxu0 %v3712_v21 }
0x14ff   :  { %438 = vrot.lane.b32.xlu0 %v3536_v22, %s3374_s3  ;;  %v1342_v22 = vld [vmem:[%s4029_s4 + $0x10] sm:$0xff]  ;;  %2986 = vmatprep.subr.mxu0 %v3371_v0 }
0x1500   :  { %2987 = vmatpush3.msra.mxu0 %v3718_v60 }
0x1501   :  { %2988 = vmatprep.subr.mxu0 %v3371_v0 }
0x1502   :  { %290 = vrot.lane.b32.xlu1 %v3507_v41, %s3374_s3  ;;  %v1343_v41 = vld [vmem:[%s4029_s4 + $0x18] sm:$0xff]  ;;  %2989 = vmatpush3.msra.mxu0 %v3726_v45 }
0x1503   :  { %735 = vrot.lane.b32.xlu0 %v3590_v46, %s3374_s3  ;;  %2949 = vmatprep.subr.mxu1 %v1343_v41  ;;  %v1340_v46 = vld [vmem:[%s4029_s4] sm:$0xff] }
0x1504   :  { %2950 = vmatpush3.msra.mxu1 %v1343_v41  ;;  %3004 = vmatprep.subr.mxu0 %v3371_v0 }
0x1505   :  { %2951 = vmatprep.subr.mxu1 %v1342_v22 }
0x1506   :  { %586 = vrot.lane.b32.xlu1 %v3563_v61, %s3374_s3  ;;  %v1341_v61 = vld [vmem:[%s4029_s4 + $0x8] sm:$0xff]  ;;  %2952 = vmatpush3.msra.mxu1 %v1342_v22 }
0x1507   :  { %1033 = vrot.lane.b32.xlu0 %v3643_v13, %s3374_s3  ;;  %2953 = vmatprep.subr.mxu1 %v1341_v61 }
0x1508   :  { %2954 = vmatpush3.msra.mxu1 %v1341_v61 }
0x1509   :  { %2955 = vmatprep.subr.mxu1 %v1340_v46 }
0x150a   :  { %884 = vrot.lane.b32.xlu1 %v3616_v31, %s3374_s3  ;;  %2956 = vmatpush3.msra.mxu1 %v1340_v46 }
0x150b   :  { %2971 = vmatprep.subr.mxu1 %v3371_v0 }
0x150e   :  { %1182 = vrot.lane.b32.xlu1 %v3658_v56, %s3374_s3 }
0x1560   :  { %v1320_v30 = vpop.permute.xlu1 %1319 }
0x1561   :  { %v1322_v31 = vpop.permute.xlu0 %1321  ;;  %v1325_v12 = vmul.f32 %v3188_v14, %v1320_v30 }
0x1562   :  { %v1326_v39 = vmul.f32 %v3670_v24, %v1322_v31 }
0x1563   :  { %1329 = vrot.lane.b32.xlu0 %v1325_v12, %s3374_s3 }
0x1564   :  { %v289_v13 = vpop.permute.xlu1 %288 }
0x1565   :  { %v437_v40 = vpop.permute.xlu0 %436  ;;  %295 = vst.msk [vmem:[#allocation2] sm:$0x1] %vm294_vm5, %v289_v13 }
0x1566   :  { %443 = vst.msk [vmem:[#allocation2] sm:$0x2] %vm442_vm6, %v437_v40 }
0x1567   :  { %1331 = vrot.lane.b32.xlu0 %v1326_v39, %s3374_s3 }
0x1568   :  { %v585_v4 = vpop.permute.xlu1 %584 }
0x1569   :  { %v734_v42 = vpop.permute.xlu0 %733  ;;  %591 = vst.msk [vmem:[#allocation2] sm:$0x4] %vm590_vm7, %v585_v4 }
0x156a   :  { %740 = vst.msk [vmem:[#allocation2] sm:$0x8] %vm739_vm8, %v734_v42 }
0x156c   :  { %v883_v6 = vpop.permute.xlu1 %882 }
0x156d   :  { %v1032_v7 = vpop.permute.xlu0 %1031  ;;  %889 = vst.msk [vmem:[#allocation2] sm:$0x10] %vm888_vm9, %v883_v6 }
0x156e   :  { %1038 = vst.msk [vmem:[#allocation2] sm:$0x20] %vm1037_vm10, %v1032_v7 }
0x1570   :  { %v1181_v43 = vpop.permute.xlu1 %1180 }
0x1571   :  { %v439_v47 = vpop.permute.xlu0 %438  ;;  %1187 = vst.msk [vmem:[#allocation2] sm:$0x40] %vm1186_vm11, %v1181_v43 }
0x1572   :  { %444 = vst.msk [vmem:[#allocation2 + $0x8] sm:$0x2] %vm442_vm6, %v439_v47 }
0x1574   :  { %v291_v48 = vpop.permute.xlu1 %290 }
0x1575   :  { %v736_v49 = vpop.permute.xlu0 %735  ;;  %296 = vst.msk [vmem:[#allocation2 + $0x8] sm:$0x1] %vm294_vm5, %v291_v48 }
0x1576   :  { %741 = vst.msk [vmem:[#allocation2 + $0x8] sm:$0x8] %vm739_vm8, %v736_v49 }
0x1578   :  { %v587_v50 = vpop.permute.xlu1 %586 }
0x1579   :  { %v1034_v51 = vpop.permute.xlu0 %1033  ;;  %592 = vst.msk [vmem:[#allocation2 + $0x8] sm:$0x4] %vm590_vm7, %v587_v50 }
0x157a   :  { %1039 = vst.msk [vmem:[#allocation2 + $0x8] sm:$0x20] %vm1037_vm10, %v1034_v51 }
0x157c   :  { %v885_v52 = vpop.permute.xlu1 %884 }
0x157d   :  { %890 = vst.msk [vmem:[#allocation2 + $0x8] sm:$0x10] %vm888_vm9, %v885_v52 }
0x1580   :  { %v1183_v53 = vpop.permute.xlu1 %1182 }
0x1581   :  { %1188 = vst.msk [vmem:[#allocation2 + $0x8] sm:$0x40] %vm1186_vm11, %v1183_v53 }
0x15ba   :  { %v1502_v58 = vpop.f32.mrf.mxu0 }
0x15bb   :  { %v1507_v63 = vrot.slane %v1502_v58, 1 }
0x15bc   :  { %v2970_v59 = vpop.f32.mrf.mxu0 }
0x15d5   :  { %v1330_v54 = vpop.permute.xlu0 %1329 }
0x15d6   :  { %1336 = vst.msk [vmem:[#allocation2] sm:$0x80] %vm1335_vm12, %v1330_v54 }
0x15d9   :  { %v1332_v55 = vpop.permute.xlu0 %1331 }
0x15da   :  { %1337 = vst.msk [vmem:[#allocation2 + $0x8] sm:$0x80] %vm1335_vm12, %v1332_v55 }
0x15dd   :  { %v1338_v56 = vld [vmem:[#allocation2] sm:$0xff] }
0x15de   :  { %2957 = vmatprep.mubr.msk.f32.mxu1 %vm158_vm4, %v1338_v56 }
0x15e1   :  { %v1339_v57 = vld [vmem:[#allocation2 + $0x8] sm:$0xff] }
0x15e2   :  { %2958 = vmatmul.mubr.msk.f32.vlgmr.msra.gmra.mxu1 %vm158_vm4, %v1339_v57 }
0x15e3   :  { %2972 = vmatpush3.msra.mxu1 %v3705_v44  ;;  %2979 = vmatprep.mubr.msk.f32.mxu1 %vm3372_vm0, %v3371_v0 }
0x15e4   :  { %2973 = vmatprep.subr.mxu1 %v3371_v0 }
0x15e5   :  { %2974 = vmatpush3.msra.mxu1 %v3712_v21 }
0x15e6   :  { %2975 = vmatprep.subr.mxu1 %v3371_v0 }
0x15e7   :  { %2976 = vmatpush3.msra.mxu1 %v3718_v60 }
0x15e8   :  { %2977 = vmatprep.subr.mxu1 %v3371_v0 }
0x15e9   :  { %2978 = vmatpush3.msra.mxu1 %v3726_v45 }
0x15ea   :  { %2993 = vmatprep.subr.mxu1 %v3371_v0 }
0x16a2   :  { %v2959_v2 = vpop.f32.mrf.mxu1 }
0x16a3   :  { %v3779_v3 = vadd.f32 %v2959_v2, %v2732_v62 }
0x16a4   :  { %v1427_v5 = vpop.f32.mrf.mxu1 }
0x16a5   :  { %v1511_v8 = vadd.f32 %v1507_v63, %v3779_v3  ;;  %v3782_v9 = vadd.f32 %v2732_v62, %v1427_v5 }
0x16a7   :  { %v1510_v11 = vadd.f32 %v1502_v58, %v3782_v9  ;;  %3195 = vtanh.f32 %v1511_v8  ;;  %v2736_v17 = vmul.f32 -1.442695, %v1511_v8 }
0x16a9   :  { %3197 = vtanh.f32 %v1510_v11  ;;  %v2735_v18 = vmul.f32 -1.442695, %v1510_v11 }
0x16aa   :  { %3199 = vpow2.f32 %v2736_v17 }
0x16ab   :  { %3201 = vpow2.f32 %v2735_v18 }
0x16b4   :  { %v3196_v15 = vpop.eup %3195 }
0x16b5   :  { %1532 = vrot.lane.b32.xlu1 %v3196_v15, %s3373_s10 }
0x16b6   :  { %v3198_v16 = vpop.eup %3197 }
0x16b7   :  { %1530 = vrot.lane.b32.xlu0 %v3198_v16, %s3373_s10  ;;  %v3200_v19 = vpop.eup %3199 }
0x16b8   :  { %v3202_v20 = vpop.eup %3201  ;;  %v1519_v23 = vadd.f32 1.0, %v3200_v19 }
0x16b9   :  { %v1518_v14 = vadd.f32 1.0, %v3202_v20 }
0x16ba   :  { %3203 = vrcp.f32 %v1519_v23 }
0x16bb   :  { %3205 = vrcp.f32 %v1518_v14 }
0x16c7   :  { %v3204_v10 = vpop.eup %3203 }
0x16c8   :  { %v3206_v26 = vpop.eup %3205  ;;  %v1527_v29 = vmul.f32 0.0, %v3204_v10 }
0x16c9   :  { %v1526_v34 = vmul.f32 0.0, %v3206_v26 }
0x1727   :  { %v1533_v24 = vpop.permute.xlu1 %1532 }
0x1728   :  { %v1537_v25 = vmul.f32 %v3204_v10, %v1533_v24 }
0x1729   :  { %v1531_v27 = vpop.permute.xlu0 %1530 }
0x172a   :  { %1542 = vrot.lane.b32.xlu1 %v1537_v25, %s3374_s3  ;;  %v1536_v28 = vmul.f32 %v3206_v26, %v1531_v27 }
0x172c   :  { %1540 = vrot.lane.b32.xlu0 %v1536_v28, %s3374_s3 }
0x179c   :  { %v1543_v32 = vpop.permute.xlu1 %1542 }
0x179d   :  { %v1547_v33 = vadd.f32 %v1543_v32, %v1527_v29 }
0x179e   :  { %v1541_v35 = vpop.permute.xlu0 %1540 }
0x179f   :  { %3207 = vtanh.f32 %v1547_v33  ;;  %v1546_v36 = vadd.f32 %v1541_v35, %v1526_v34  ;;  %v1669_v57 = vrot.slane %v1547_v33, 7 }
0x17a1   :  { %3209 = vtanh.f32 %v1546_v36  ;;  %v1668_v59 = vrot.slane %v1546_v36, 7 }
0x17ac   :  { %v3208_v37 = vpop.eup %3207 }
0x17ad   :  { %1554 = vrot.lane.b32.xlu1 %v3208_v37, %s3373_s10 }
0x17ae   :  { %v3210_v1 = vpop.eup %3209 }
0x17af   :  { %1552 = vrot.lane.b32.xlu0 %v3210_v1, %s3373_s10 }
0x181f   :  { %v1555_v38 = vpop.permute.xlu1 %1554 }
0x1820   :  { %v3791_v41 = vmul.f32 %v3204_v10, %v1555_v38 }
0x1821   :  { %v1553_v61 = vpop.permute.xlu0 %1552 }
0x1822   :  { %v1570_v22 = vrot.slane %v3791_v41, 7  ;;  %v3794_v46 = vmul.f32 %v3206_v26, %v1553_v61 }
0x1824   :  { %v1571_v30 = vsel %vm298_vm3, %v1570_v22, %v3794_v46 }
0x1825   :  { %1572 = vrot.lane.b32.xlu1 %v1571_v30, %s3374_s3 }
0x1897   :  { %v1573_v31 = vpop.permute.xlu1 %1572 }
0x1898   :  { %2980 = vmatmul.mubr.msk.f32.vlgmr.msra.gmra.mxu1 %vm158_vm4, %v1573_v31 }
0x1899   :  { %2994 = vmatpush3.msra.mxu1 %v3705_v44  ;;  %3001 = vmatprep.mubr.msk.f32.mxu1 %vm3372_vm0, %v3371_v0 }
0x189a   :  { %2995 = vmatprep.subr.mxu1 %v3371_v0 }
0x189b   :  { %2996 = vmatpush3.msra.mxu1 %v3712_v21 }
0x189c   :  { %2997 = vmatprep.subr.mxu1 %v3371_v0 }
0x189d   :  { %2998 = vmatpush3.msra.mxu1 %v3718_v60 }
0x189e   :  { %2999 = vmatprep.subr.mxu1 %v3371_v0 }
0x189f   :  { %3000 = vmatpush3.msra.mxu1 %v3726_v45 }
0x18a0   :  { %3015 = vmatprep.subr.mxu1 %v3371_v0 }
0x1958   :  { %v1642_v12 = vpop.f32.mrf.mxu1 }
0x1959   :  { %v1647_v13 = vrot.slane %v1642_v12, 7  ;;  %v1651_v39 = vadd.f32 %v1642_v12, %v3779_v3 }
0x195a   :  { %v2981_v40 = vpop.f32.mrf.mxu1 }
0x195b   :  { %v1650_v4 = vadd.f32 %v1647_v13, %v3782_v9  ;;  %3211 = vtanh.f32 %v1651_v39  ;;  %v2739_v7 = vmul.f32 -1.442695, %v1651_v39 }
0x195d   :  { %3213 = vtanh.f32 %v1650_v4  ;;  %v2738_v43 = vmul.f32 -1.442695, %v1650_v4 }
0x195e   :  { %3215 = vpow2.f32 %v2739_v7 }
0x195f   :  { %3217 = vpow2.f32 %v2738_v43 }
0x1968   :  { %v3212_v42 = vpop.eup %3211 }
0x1969   :  { %1678 = vrot.lane.b32.xlu1 %v3212_v42, %s3373_s10 }
0x196a   :  { %v3214_v6 = vpop.eup %3213 }
0x196b   :  { %1676 = vrot.lane.b32.xlu0 %v3214_v6, %s3373_s10  ;;  %v3216_v47 = vpop.eup %3215 }
0x196c   :  { %v3218_v48 = vpop.eup %3217  ;;  %v1659_v49 = vadd.f32 1.0, %v3216_v47 }
0x196d   :  { %v1658_v50 = vadd.f32 1.0, %v3218_v48 }
0x196e   :  { %3219 = vrcp.f32 %v1659_v49 }
0x196f   :  { %3221 = vrcp.f32 %v1658_v50 }
0x197b   :  { %v3220_v51 = vpop.eup %3219 }
0x197c   :  { %v3222_v54 = vpop.eup %3221  ;;  %v1673_v58 = vmul.f32 %v3220_v51, %v1669_v57 }
0x197d   :  { %v1672_v2 = vmul.f32 %v3222_v54, %v1668_v59 }
0x19db   :  { %v1679_v52 = vpop.permute.xlu1 %1678 }
0x19dc   :  { %v1683_v53 = vmul.f32 %v3220_v51, %v1679_v52 }
0x19dd   :  { %v1677_v55 = vpop.permute.xlu0 %1676 }
0x19de   :  { %1688 = vrot.lane.b32.xlu1 %v1683_v53, %s3374_s3  ;;  %v1682_v56 = vmul.f32 %v3222_v54, %v1677_v55 }
0x19e0   :  { %1686 = vrot.lane.b32.xlu0 %v1682_v56, %s3374_s3 }
0x1a50   :  { %v1689_v62 = vpop.permute.xlu1 %1688 }
0x1a51   :  { %v1693_v63 = vadd.f32 %v1689_v62, %v1673_v58 }
0x1a52   :  { %v1687_v5 = vpop.permute.xlu0 %1686 }
0x1a53   :  { %3223 = vtanh.f32 %v1693_v63  ;;  %v1692_v8 = vadd.f32 %v1687_v5, %v1672_v2  ;;  %v1816_v39 = vrot.slane %v1693_v63, 7 }
0x1a55   :  { %3225 = vtanh.f32 %v1692_v8  ;;  %v1815_v13 = vrot.slane %v1692_v8, 7 }
0x1a60   :  { %v3224_v11 = vpop.eup %3223 }
0x1a61   :  { %1700 = vrot.lane.b32.xlu1 %v3224_v11, %s3373_s10 }
0x1a62   :  { %v3226_v15 = vpop.eup %3225 }
0x1a63   :  { %1698 = vrot.lane.b32.xlu0 %v3226_v15, %s3373_s10 }
0x1ad3   :  { %v1701_v16 = vpop.permute.xlu1 %1700 }
0x1ad4   :  { %v3820_v19 = vmul.f32 %v3220_v51, %v1701_v16 }
0x1ad5   :  { %v1699_v17 = vpop.permute.xlu0 %1698 }
0x1ad6   :  { %v3818_v18 = vmul.f32 %v3222_v54, %v1699_v17 }
0x1ad8   :  { %v1716_v20 = vrot.slane %v3818_v18, 1 }
0x1ada   :  { %v1717_v23 = vsel %vm298_vm3, %v3820_v19, %v1716_v20 }
0x1adb   :  { %1718 = vrot.lane.b32.xlu0 %v1717_v23, %s3374_s3 }
0x1b4d   :  { %v1719_v14 = vpop.permute.xlu0 %1718 }
0x1b4e   :  { %2991 = vmatmul.mubr.msk.f32.vlgmr.msra.gmra.mxu0 %vm158_vm4, %v1719_v14 }
0x1b4f   :  { %3005 = vmatpush3.msra.mxu0 %v3705_v44  ;;  %3012 = vmatprep.mubr.msk.f32.mxu0 %vm3372_vm0, %v3371_v0 }
0x1b50   :  { %3006 = vmatprep.subr.mxu0 %v3371_v0 }
0x1b51   :  { %3007 = vmatpush3.msra.mxu0 %v3712_v21 }
0x1b52   :  { %3008 = vmatprep.subr.mxu0 %v3371_v0 }
0x1b53   :  { %3009 = vmatpush3.msra.mxu0 %v3718_v60 }
0x1b54   :  { %3010 = vmatprep.subr.mxu0 %v3371_v0 }
0x1b55   :  { %3011 = vmatpush3.msra.mxu0 %v3726_v45 }
0x1b56   :  { %3026 = vmatprep.subr.mxu0 %v3371_v0 }
0x1c0e   :  { %v1788_v10 = vpop.f32.mrf.mxu0 }
0x1c0f   :  { %v1793_v24 = vrot.slane %v1788_v10, 6  ;;  %v1794_v25 = vrot.slane %v1788_v10, 7 }
0x1c10   :  { %v2992_v26 = vpop.f32.mrf.mxu0 }
0x1c11   :  { %v1797_v27 = vadd.f32 %v1793_v24, %v3782_v9  ;;  %v1798_v28 = vadd.f32 %v1794_v25, %v3779_v3 }
0x1c13   :  { %3227 = vtanh.f32 %v1797_v27  ;;  %v2741_v33 = vmul.f32 -1.442695, %v1797_v27  ;;  %v2742_v34 = vmul.f32 -1.442695, %v1798_v28 }
0x1c14   :  { %3229 = vtanh.f32 %v1798_v28 }
0x1c15   :  { %3231 = vpow2.f32 %v2741_v33 }
0x1c16   :  { %3233 = vpow2.f32 %v2742_v34 }
0x1c20   :  { %v3228_v29 = vpop.eup %3227 }
0x1c21   :  { %v3230_v32 = vpop.eup %3229  ;;  %1823 = vrot.lane.b32.xlu1 %v3228_v29, %s3373_s10 }
0x1c22   :  { %1825 = vrot.lane.b32.xlu0 %v3230_v32, %s3373_s10  ;;  %v3232_v35 = vpop.eup %3231 }
0x1c23   :  { %v3234_v36 = vpop.eup %3233  ;;  %v1805_v37 = vadd.f32 1.0, %v3232_v35 }
0x1c24   :  { %v1806_v1 = vadd.f32 1.0, %v3234_v36 }
0x1c25   :  { %3235 = vrcp.f32 %v1805_v37 }
0x1c26   :  { %3237 = vrcp.f32 %v1806_v1 }
0x1c32   :  { %v3236_v38 = vpop.eup %3235 }
0x1c33   :  { %v3238_v61 = vpop.eup %3237  ;;  %v1819_v40 = vmul.f32 %v3236_v38, %v1815_v13 }
0x1c34   :  { %v1820_v4 = vmul.f32 %v3238_v61, %v1816_v39 }
0x1c93   :  { %v1824_v22 = vpop.permute.xlu1 %1823 }
0x1c94   :  { %v1826_v30 = vpop.permute.xlu0 %1825  ;;  %v1829_v31 = vmul.f32 %v3236_v38, %v1824_v22 }
0x1c95   :  { %v1830_v12 = vmul.f32 %v3238_v61, %v1826_v30 }
0x1c96   :  { %1833 = vrot.lane.b32.xlu1 %v1829_v31, %s3374_s3 }
0x1c97   :  { %1835 = vrot.lane.b32.xlu0 %v1830_v12, %s3374_s3 }
0x1d08   :  { %v1834_v42 = vpop.permute.xlu1 %1833 }
0x1d09   :  { %v1836_v6 = vpop.permute.xlu0 %1835  ;;  %v1839_v7 = vadd.f32 %v1834_v42, %v1819_v40 }
0x1d0a   :  { %v1840_v43 = vadd.f32 %v1836_v6, %v1820_v4 }
0x1d0b   :  { %3239 = vtanh.f32 %v1839_v7  ;;  %v1963_v28 = vrot.slane %v1839_v7, 7 }
0x1d0c   :  { %3241 = vtanh.f32 %v1840_v43  ;;  %v1964_v29 = vrot.slane %v1840_v43, 7 }
0x1d18   :  { %v3240_v47 = vpop.eup %3239 }
0x1d19   :  { %v3242_v48 = vpop.eup %3241  ;;  %1845 = vrot.lane.b32.xlu1 %v3240_v47, %s3373_s10 }
0x1d1a   :  { %1847 = vrot.lane.b32.xlu0 %v3242_v48, %s3373_s10 }
0x1d8b   :  { %v1846_v49 = vpop.permute.xlu1 %1845 }
0x1d8c   :  { %v1848_v50 = vpop.permute.xlu0 %1847  ;;  %v3845_v51 = vmul.f32 %v3236_v38, %v1846_v49 }
0x1d8d   :  { %v3847_v52 = vmul.f32 %v3238_v61, %v1848_v50 }
0x1d8e   :  { %v1863_v53 = vrot.slane %v3845_v51, 2 }
0x1d8f   :  { %v1864_v54 = vrot.slane %v3847_v52, 1 }
0x1d91   :  { %v1865_v55 = vsel %vm298_vm3, %v1864_v54, %v1863_v53 }
0x1d92   :  { %1866 = vrot.lane.b32.xlu1 %v1865_v55, %s3374_s3 }
0x1e04   :  { %v1867_v56 = vpop.permute.xlu1 %1866 }
0x1e05   :  { %3002 = vmatmul.mubr.msk.f32.vlgmr.msra.gmra.mxu1 %vm158_vm4, %v1867_v56 }
0x1e06   :  { %3016 = vmatpush3.msra.mxu1 %v3705_v44  ;;  %3023 = vmatprep.mubr.msk.f32.mxu1 %vm3372_vm0, %v3371_v0 }
0x1e07   :  { %3017 = vmatprep.subr.mxu1 %v3371_v0 }
0x1e08   :  { %3018 = vmatpush3.msra.mxu1 %v3712_v21 }
0x1e09   :  { %3019 = vmatprep.subr.mxu1 %v3371_v0 }
0x1e0a   :  { %3020 = vmatpush3.msra.mxu1 %v3718_v60 }
0x1e0b   :  { %3021 = vmatprep.subr.mxu1 %v3371_v0 }
0x1e0c   :  { %3022 = vmatpush3.msra.mxu1 %v3726_v45 }
0x1e0d   :  { %3037 = vmatprep.subr.mxu1 %v3371_v0 }
0x1ec5   :  { %v1936_v57 = vpop.f32.mrf.mxu1 }
0x1ec6   :  { %v1941_v58 = vrot.slane %v1936_v57, 5  ;;  %v1942_v59 = vrot.slane %v1936_v57, 6 }
0x1ec7   :  { %v3003_v62 = vpop.f32.mrf.mxu1 }
0x1ec8   :  { %v1945_v63 = vadd.f32 %v1941_v58, %v3782_v9  ;;  %v1946_v2 = vadd.f32 %v1942_v59, %v3779_v3 }
0x1eca   :  { %3243 = vtanh.f32 %v1945_v63  ;;  %v2744_v11 = vmul.f32 -1.442695, %v1945_v63  ;;  %v2745_v15 = vmul.f32 -1.442695, %v1946_v2 }
0x1ecb   :  { %3245 = vtanh.f32 %v1946_v2 }
0x1ecc   :  { %3247 = vpow2.f32 %v2744_v11 }
0x1ecd   :  { %3249 = vpow2.f32 %v2745_v15 }
0x1ed7   :  { %v3244_v5 = vpop.eup %3243 }
0x1ed8   :  { %v3246_v8 = vpop.eup %3245  ;;  %1971 = vrot.lane.b32.xlu0 %v3244_v5, %s3373_s10 }
0x1ed9   :  { %1973 = vrot.lane.b32.xlu1 %v3246_v8, %s3373_s10  ;;  %v3248_v16 = vpop.eup %3247 }
0x1eda   :  { %v3250_v17 = vpop.eup %3249  ;;  %v1953_v20 = vadd.f32 1.0, %v3248_v16 }
0x1edb   :  { %v1954_v23 = vadd.f32 1.0, %v3250_v17 }
0x1edc   :  { %3251 = vrcp.f32 %v1953_v20 }
0x1edd   :  { %3253 = vrcp.f32 %v1954_v23 }
0x1ee9   :  { %v3252_v14 = vpop.eup %3251 }
0x1eea   :  { %v3254_v24 = vpop.eup %3253  ;;  %v1967_v32 = vmul.f32 %v3252_v14, %v1963_v28 }
0x1eeb   :  { %v1968_v33 = vmul.f32 %v3254_v24, %v1964_v29 }
0x1f4a   :  { %v1972_v10 = vpop.permute.xlu0 %1971 }
0x1f4b   :  { %v1974_v25 = vpop.permute.xlu1 %1973  ;;  %v1977_v26 = vmul.f32 %v3252_v14, %v1972_v10 }
0x1f4c   :  { %v1978_v27 = vmul.f32 %v3254_v24, %v1974_v25 }
0x1f4d   :  { %1981 = vrot.lane.b32.xlu0 %v1977_v26, %s3374_s3 }
0x1f4e   :  { %1983 = vrot.lane.b32.xlu1 %v1978_v27, %s3374_s3 }
0x1fbf   :  { %v1982_v34 = vpop.permute.xlu0 %1981 }
0x1fc0   :  { %v1984_v35 = vpop.permute.xlu1 %1983  ;;  %v1987_v36 = vadd.f32 %v1982_v34, %v1967_v32 }
0x1fc1   :  { %v1988_v37 = vadd.f32 %v1984_v35, %v1968_v33 }
0x1fc2   :  { %3255 = vtanh.f32 %v1987_v36  ;;  %v2111_v8 = vrot.slane %v1987_v36, 7 }
0x1fc3   :  { %3257 = vtanh.f32 %v1988_v37  ;;  %v2112_v11 = vrot.slane %v1988_v37, 7 }
0x1fcf   :  { %v3256_v1 = vpop.eup %3255 }
0x1fd0   :  { %v3258_v38 = vpop.eup %3257  ;;  %1993 = vrot.lane.b32.xlu0 %v3256_v1, %s3373_s10 }
0x1fd1   :  { %1995 = vrot.lane.b32.xlu1 %v3258_v38, %s3373_s10 }
0x2042   :  { %v1994_v22 = vpop.permute.xlu0 %1993 }
0x2043   :  { %v1996_v61 = vpop.permute.xlu1 %1995  ;;  %v3872_v30 = vmul.f32 %v3252_v14, %v1994_v22 }
0x2044   :  { %v3874_v31 = vmul.f32 %v3254_v24, %v1996_v61 }
0x2045   :  { %v2011_v12 = vrot.slane %v3872_v30, 3 }
0x2046   :  { %v2012_v13 = vrot.slane %v3874_v31, 2 }
0x2048   :  { %v2013_v39 = vsel %vm298_vm3, %v2012_v13, %v2011_v12 }
0x2049   :  { %2014 = vrot.lane.b32.xlu0 %v2013_v39, %s3374_s3 }
0x20bb   :  { %v2015_v40 = vpop.permute.xlu0 %2014 }
0x20bc   :  { %3013 = vmatmul.mubr.msk.f32.vlgmr.msra.gmra.mxu0 %vm158_vm4, %v2015_v40 }
0x20bd   :  { %3027 = vmatpush3.msra.mxu0 %v3705_v44  ;;  %3034 = vmatprep.mubr.msk.f32.mxu0 %vm3372_vm0, %v3371_v0 }
0x20be   :  { %3028 = vmatprep.subr.mxu0 %v3371_v0 }
0x20bf   :  { %3029 = vmatpush3.msra.mxu0 %v3712_v21 }
0x20c0   :  { %3030 = vmatprep.subr.mxu0 %v3371_v0 }
0x20c1   :  { %3031 = vmatpush3.msra.mxu0 %v3718_v60 }
0x20c2   :  { %3032 = vmatprep.subr.mxu0 %v3371_v0 }
0x20c3   :  { %3033 = vmatpush3.msra.mxu0 %v3726_v45 }
0x217c   :  { %v2084_v4 = vpop.f32.mrf.mxu0 }
0x217d   :  { %v2089_v42 = vrot.slane %v2084_v4, 4  ;;  %v2090_v6 = vrot.slane %v2084_v4, 5 }
0x217e   :  { %v3014_v7 = vpop.f32.mrf.mxu0 }
0x217f   :  { %v2093_v43 = vadd.f32 %v2089_v42, %v3782_v9  ;;  %v2094_v47 = vadd.f32 %v2090_v6, %v3779_v3 }
0x2181   :  { %3259 = vtanh.f32 %v2093_v43  ;;  %v2747_v50 = vmul.f32 -1.442695, %v2093_v43  ;;  %v2748_v53 = vmul.f32 -1.442695, %v2094_v47 }
0x2182   :  { %3261 = vtanh.f32 %v2094_v47 }
0x2183   :  { %3263 = vpow2.f32 %v2747_v50 }
0x2184   :  { %3265 = vpow2.f32 %v2748_v53 }
0x218e   :  { %v3260_v48 = vpop.eup %3259 }
0x218f   :  { %v3262_v49 = vpop.eup %3261  ;;  %2119 = vrot.lane.b32.xlu1 %v3260_v48, %s3373_s10 }
0x2190   :  { %2121 = vrot.lane.b32.xlu0 %v3262_v49, %s3373_s10  ;;  %v3264_v54 = vpop.eup %3263 }
0x2191   :  { %v3266_v55 = vpop.eup %3265  ;;  %v2101_v56 = vadd.f32 1.0, %v3264_v54 }
0x2192   :  { %v2102_v57 = vadd.f32 1.0, %v3266_v55 }
0x2193   :  { %3267 = vrcp.f32 %v2101_v56 }
0x2194   :  { %3269 = vrcp.f32 %v2102_v57 }
0x21a0   :  { %v3268_v58 = vpop.eup %3267 }
0x21a1   :  { %v3270_v62 = vpop.eup %3269  ;;  %v2115_v15 = vmul.f32 %v3268_v58, %v2111_v8 }
0x21a2   :  { %v2116_v16 = vmul.f32 %v3270_v62, %v2112_v11 }
0x2201   :  { %v2120_v59 = vpop.permute.xlu1 %2119 }
0x2202   :  { %v2122_v63 = vpop.permute.xlu0 %2121  ;;  %v2125_v2 = vmul.f32 %v3268_v58, %v2120_v59 }
0x2203   :  { %v2126_v5 = vmul.f32 %v3270_v62, %v2122_v63 }
0x2204   :  { %2129 = vrot.lane.b32.xlu1 %v2125_v2, %s3374_s3 }
0x2205   :  { %2131 = vrot.lane.b32.xlu0 %v2126_v5, %s3374_s3 }
0x2276   :  { %v2130_v17 = vpop.permute.xlu1 %2129 }
0x2277   :  { %v2132_v20 = vpop.permute.xlu0 %2131  ;;  %v2135_v23 = vadd.f32 %v2130_v17, %v2115_v15 }
0x2278   :  { %v2136_v14 = vadd.f32 %v2132_v20, %v2116_v16 }
0x2279   :  { %3271 = vtanh.f32 %v2135_v23  ;;  %v2259_v43 = vrot.slane %v2135_v23, 7 }
0x227a   :  { %3273 = vtanh.f32 %v2136_v14  ;;  %v2260_v47 = vrot.slane %v2136_v14, 7 }
0x2286   :  { %v3272_v10 = vpop.eup %3271 }
0x2287   :  { %v3274_v24 = vpop.eup %3273  ;;  %2141 = vrot.lane.b32.xlu1 %v3272_v10, %s3373_s10 }
0x2288   :  { %2143 = vrot.lane.b32.xlu0 %v3274_v24, %s3373_s10 }
0x22f9   :  { %v2142_v25 = vpop.permute.xlu1 %2141 }
0x22fa   :  { %v2144_v26 = vpop.permute.xlu0 %2143  ;;  %v3898_v27 = vmul.f32 %v3268_v58, %v2142_v25 }
0x22fb   :  { %v3900_v28 = vmul.f32 %v3270_v62, %v2144_v26 }
0x22fc   :  { %v2159_v29 = vrot.slane %v3898_v27, 4 }
0x22fd   :  { %v2160_v32 = vrot.slane %v3900_v28, 3 }
0x22ff   :  { %v2161_v33 = vsel %vm298_vm3, %v2160_v32, %v2159_v29 }
0x2300   :  { %2162 = vrot.lane.b32.xlu1 %v2161_v33, %s3374_s3 }
0x2372   :  { %v2163_v34 = vpop.permute.xlu1 %2162 }
0x2373   :  { %3024 = vmatmul.mubr.msk.f32.vlgmr.msra.gmra.mxu1 %vm158_vm4, %v2163_v34 }
0x2374   :  { %3038 = vmatpush3.msra.mxu1 %v3705_v44  ;;  %3045 = vmatprep.mubr.msk.f32.mxu1 %vm3372_vm0, %v3371_v0 }
0x2375   :  { %3039 = vmatprep.subr.mxu1 %v3371_v0 }
0x2376   :  { %3040 = vmatpush3.msra.mxu1 %v3712_v21 }
0x2377   :  { %3041 = vmatprep.subr.mxu1 %v3371_v0 }
0x2378   :  { %3042 = vmatpush3.msra.mxu1 %v3718_v60 }
0x2379   :  { %3043 = vmatprep.subr.mxu1 %v3371_v0 }
0x237a   :  { %3044 = vmatpush3.msra.mxu1 %v3726_v45 }
0x2433   :  { %v2232_v35 = vpop.f32.mrf.mxu1 }
0x2434   :  { %v2237_v36 = vrot.slane %v2232_v35, 3  ;;  %v2238_v37 = vrot.slane %v2232_v35, 4 }
0x2435   :  { %v3025_v1 = vpop.f32.mrf.mxu1 }
0x2436   :  { %v2241_v44 = vadd.f32 %v2237_v36, %v3782_v9  ;;  %v2242_v38 = vadd.f32 %v2238_v37, %v3779_v3 }
0x2438   :  { %3275 = vtanh.f32 %v2241_v44  ;;  %v2750_v60 = vmul.f32 -1.442695, %v2241_v44  ;;  %v2751_v0 = vmul.f32 -1.442695, %v2242_v38 }
0x2439   :  { %3277 = vtanh.f32 %v2242_v38 }
0x243a   :  { %3279 = vpow2.f32 %v2750_v60 }
0x243b   :  { %3281 = vpow2.f32 %v2751_v0 }
0x2445   :  { %v3276_v22 = vpop.eup %3275 }
0x2446   :  { %v3278_v21 = vpop.eup %3277  ;;  %2267 = vrot.lane.b32.xlu0 %v3276_v22, %s3373_s10 }
0x2447   :  { %2269 = vrot.lane.b32.xlu1 %v3278_v21, %s3373_s10  ;;  %v3280_v45 = vpop.eup %3279 }
0x2448   :  { %v3282_v61 = vpop.eup %3281  ;;  %v2249_v12 = vadd.f32 1.0, %v3280_v45 }
0x2449   :  { %v2250_v13 = vadd.f32 1.0, %v3282_v61 }
0x244a   :  { %3283 = vrcp.f32 %v2249_v12 }
0x244b   :  { %3285 = vrcp.f32 %v2250_v13 }
0x2457   :  { %v3284_v39 = vpop.eup %3283 }
0x2458   :  { %v3286_v4 = vpop.eup %3285  ;;  %v2263_v48 = vmul.f32 %v3284_v39, %v2259_v43 }
0x2459   :  { %v2264_v49 = vmul.f32 %v3286_v4, %v2260_v47 }
0x24b8   :  { %v2268_v40 = vpop.permute.xlu0 %2267 }
0x24b9   :  { %v2270_v42 = vpop.permute.xlu1 %2269  ;;  %v2273_v6 = vmul.f32 %v3284_v39, %v2268_v40 }
0x24ba   :  { %v2274_v7 = vmul.f32 %v3286_v4, %v2270_v42 }
0x24bb   :  { %2277 = vrot.lane.b32.xlu0 %v2273_v6, %s3374_s3 }
0x24bc   :  { %2279 = vrot.lane.b32.xlu1 %v2274_v7, %s3374_s3 }
0x252d   :  { %v2278_v50 = vpop.permute.xlu0 %2277 }
0x252e   :  { %v2280_v53 = vpop.permute.xlu1 %2279  ;;  %v2283_v54 = vadd.f32 %v2278_v50, %v2263_v48 }
0x252f   :  { %v2284_v55 = vadd.f32 %v2280_v53, %v2264_v49 }
0x2530   :  { %3287 = vtanh.f32 %v2283_v54  ;;  %v2407_v22 = vrot.slane %v2283_v54, 7 }
0x2531   :  { %3289 = vtanh.f32 %v2284_v55  ;;  %v2408_v21 = vrot.slane %v2284_v55, 7 }
0x253d   :  { %v3288_v56 = vpop.eup %3287 }
0x253e   :  { %v3290_v57 = vpop.eup %3289  ;;  %2289 = vrot.lane.b32.xlu0 %v3288_v56, %s3373_s10 }
0x253f   :  { %2291 = vrot.lane.b32.xlu1 %v3290_v57, %s3373_s10 }
0x25b0   :  { %v2290_v58 = vpop.permute.xlu0 %2289 }
0x25b1   :  { %v2292_v59 = vpop.permute.xlu1 %2291  ;;  %v3924_v62 = vmul.f32 %v3284_v39, %v2290_v58 }
0x25b2   :  { %v3926_v63 = vmul.f32 %v3286_v4, %v2292_v59 }
0x25b3   :  { %v2307_v2 = vrot.slane %v3924_v62, 5 }
0x25b4   :  { %v2308_v5 = vrot.slane %v3926_v63, 4 }
0x25b6   :  { %v2309_v8 = vsel %vm298_vm3, %v2308_v5, %v2307_v2 }
0x25b7   :  { %2310 = vrot.lane.b32.xlu0 %v2309_v8, %s3374_s3 }
0x2629   :  { %v2311_v11 = vpop.permute.xlu0 %2310 }
0x262a   :  { %3035 = vmatmul.mubr.msk.f32.vlgmr.msra.gmra.mxu0 %vm158_vm4, %v2311_v11 }
0x26ea   :  { %v2380_v15 = vpop.f32.mrf.mxu0 }
0x26eb   :  { %v2385_v16 = vrot.slane %v2380_v15, 2  ;;  %v2386_v17 = vrot.slane %v2380_v15, 3 }
0x26ec   :  { %v3036_v20 = vpop.f32.mrf.mxu0 }
0x26ed   :  { %v2389_v23 = vadd.f32 %v2385_v16, %v3782_v9  ;;  %v2390_v14 = vadd.f32 %v2386_v17, %v3779_v3 }
0x26ef   :  { %3291 = vtanh.f32 %v2389_v23  ;;  %v2753_v25 = vmul.f32 -1.442695, %v2389_v23  ;;  %v2754_v26 = vmul.f32 -1.442695, %v2390_v14 }
0x26f0   :  { %3293 = vtanh.f32 %v2390_v14 }
0x26f1   :  { %3295 = vpow2.f32 %v2753_v25 }
0x26f2   :  { %3297 = vpow2.f32 %v2754_v26 }
0x26fc   :  { %v3292_v10 = vpop.eup %3291 }
0x26fd   :  { %v3294_v24 = vpop.eup %3293  ;;  %2415 = vrot.lane.b32.xlu1 %v3292_v10, %s3373_s10 }
0x26fe   :  { %2417 = vrot.lane.b32.xlu0 %v3294_v24, %s3373_s10  ;;  %v3296_v29 = vpop.eup %3295 }
0x26ff   :  { %v3298_v32 = vpop.eup %3297  ;;  %v2397_v33 = vadd.f32 1.0, %v3296_v29 }
0x2700   :  { %v2398_v34 = vadd.f32 1.0, %v3298_v32 }
0x2701   :  { %3299 = vrcp.f32 %v2397_v33 }
0x2702   :  { %3301 = vrcp.f32 %v2398_v34 }
0x270e   :  { %v3300_v35 = vpop.eup %3299 }
0x270f   :  { %v3302_v37 = vpop.eup %3301  ;;  %v2411_v60 = vmul.f32 %v3300_v35, %v2407_v22 }
0x2710   :  { %v2412_v0 = vmul.f32 %v3302_v37, %v2408_v21 }
0x276f   :  { %v2416_v36 = vpop.permute.xlu1 %2415 }
0x2770   :  { %v2418_v1 = vpop.permute.xlu0 %2417  ;;  %v2421_v44 = vmul.f32 %v3300_v35, %v2416_v36 }
0x2771   :  { %v2422_v38 = vmul.f32 %v3302_v37, %v2418_v1 }
0x2772   :  { %2425 = vrot.lane.b32.xlu1 %v2421_v44, %s3374_s3 }
0x2773   :  { %2427 = vrot.lane.b32.xlu0 %v2422_v38, %s3374_s3 }
0x27e4   :  { %v2426_v45 = vpop.permute.xlu1 %2425 }
0x27e5   :  { %v2428_v61 = vpop.permute.xlu0 %2427  ;;  %v2431_v12 = vadd.f32 %v2426_v45, %v2411_v60 }
0x27e6   :  { %v2432_v13 = vadd.f32 %v2428_v61, %v2412_v0 }
0x27e7   :  { %3303 = vtanh.f32 %v2431_v12  ;;  %v2555_v10 = vrot.slane %v2431_v12, 7 }
0x27e8   :  { %3305 = vtanh.f32 %v2432_v13  ;;  %v2556_v24 = vrot.slane %v2432_v13, 7 }
0x27f4   :  { %v3304_v39 = vpop.eup %3303 }
0x27f5   :  { %v3306_v40 = vpop.eup %3305  ;;  %2437 = vrot.lane.b32.xlu1 %v3304_v39, %s3373_s10 }
0x27f6   :  { %2439 = vrot.lane.b32.xlu0 %v3306_v40, %s3373_s10 }
0x2867   :  { %v2438_v4 = vpop.permute.xlu1 %2437 }
0x2868   :  { %v2440_v42 = vpop.permute.xlu0 %2439  ;;  %v2443_v6 = vmul.f32 %v3300_v35, %v2438_v4  ;;  %v2758_v4 = vld [vmem:[%s4033_s8] ss:$0 sm:$0xff] }
0x2869   :  { %v3941_v7 = vmul.f32 %v3302_v37, %v2440_v42 }
0x286a   :  { %v2455_v43 = vrot.slane %v2443_v6, 6 }
0x286b   :  { %v2456_v47 = vrot.slane %v3941_v7, 5 }
0x286d   :  { %v2457_v48 = vsel %vm298_vm3, %v2456_v47, %v2455_v43 }
0x286e   :  { %2458 = vrot.lane.b32.xlu1 %v2457_v48, %s3374_s3 }
0x28e0   :  { %v2459_v49 = vpop.permute.xlu1 %2458 }
0x28e1   :  { %3046 = vmatmul.mubr.msk.f32.vlgmr.msra.gmra.mxu1 %vm158_vm4, %v2459_v49 }
0x29a1   :  { %v2528_v50 = vpop.f32.mrf.mxu1 }
0x29a2   :  { %v2533_v53 = vrot.slane %v2528_v50, 1  ;;  %v2534_v54 = vrot.slane %v2528_v50, 2 }
0x29a3   :  { %v3047_v55 = vpop.f32.mrf.mxu1 }
0x29a4   :  { %v2537_v56 = vadd.f32 %v2533_v53, %v3782_v9  ;;  %v2538_v57 = vadd.f32 %v2534_v54, %v3779_v3 }
0x29a6   :  { %3307 = vtanh.f32 %v2537_v56  ;;  %v2756_v2 = vmul.f32 -1.442695, %v2537_v56  ;;  %v2757_v5 = vmul.f32 -1.442695, %v2538_v57 }
0x29a7   :  { %3309 = vtanh.f32 %v2538_v57 }
0x29a8   :  { %3311 = vpow2.f32 %v2756_v2 }
0x29a9   :  { %3313 = vpow2.f32 %v2757_v5 }
0x29b3   :  { %v3308_v58 = vpop.eup %3307 }
0x29b4   :  { %v3310_v59 = vpop.eup %3309  ;;  %2563 = vrot.lane.b32.xlu0 %v3308_v58, %s3373_s10 }
0x29b5   :  { %2565 = vrot.lane.b32.xlu1 %v3310_v59, %s3373_s10  ;;  %v3312_v8 = vpop.eup %3311 }
0x29b6   :  { %v3314_v11 = vpop.eup %3313  ;;  %v2545_v15 = vadd.f32 1.0, %v3312_v8 }
0x29b7   :  { %v2546_v16 = vadd.f32 1.0, %v3314_v11 }
0x29b8   :  { %3315 = vrcp.f32 %v2545_v15 }
0x29b9   :  { %3317 = vrcp.f32 %v2546_v16 }
0x29c5   :  { %v3316_v9 = vpop.eup %3315 }
0x29c6   :  { %v3318_v17 = vpop.eup %3317  ;;  %v2559_v25 = vmul.f32 %v3316_v9, %v2555_v10 }
0x29c7   :  { %v2560_v26 = vmul.f32 %v3318_v17, %v2556_v24 }
0x2a26   :  { %v2564_v3 = vpop.permute.xlu0 %2563 }
0x2a27   :  { %v2566_v20 = vpop.permute.xlu1 %2565  ;;  %v2569_v23 = vmul.f32 %v3316_v9, %v2564_v3 }
0x2a28   :  { %v2570_v14 = vmul.f32 %v3318_v17, %v2566_v20 }
0x2a29   :  { %2573 = vrot.lane.b32.xlu0 %v2569_v23, %s3374_s3 }
0x2a2a   :  { %2575 = vrot.lane.b32.xlu1 %v2570_v14, %s3374_s3 }
0x2a9b   :  { %v2574_v29 = vpop.permute.xlu0 %2573 }
0x2a9c   :  { %v2576_v32 = vpop.permute.xlu1 %2575  ;;  %v2579_v33 = vadd.f32 %v2574_v29, %v2559_v25 }
0x2a9d   :  { %v2580_v34 = vadd.f32 %v2576_v32, %v2560_v26 }
0x2a9e   :  { %3319 = vtanh.f32 %v2579_v33 }
0x2a9f   :  { %3321 = vtanh.f32 %v2580_v34 }
0x2aab   :  { %v3320_v35 = vpop.eup %3319 }
0x2aac   :  { %v3322_v36 = vpop.eup %3321  ;;  %2585 = vrot.lane.b32.xlu0 %v3320_v35, %s3373_s10 }
0x2aad   :  { %2587 = vrot.lane.b32.xlu1 %v3322_v36, %s3373_s10 }
0x2ab0   :  { %1562 = vrot.lane.b32.xlu0 %v3794_v46, %s3374_s3  ;;  %v2608_v46 = vld [vmem:[%s4032_s7 + $0x18] sm:$0xff] }
0x2ab1   :  { %1708 = vrot.lane.b32.xlu1 %v3818_v18, %s3374_s3  ;;  %3048 = vmatprep.subr.mxu0 %v2608_v46  ;;  %v2606_v18 = vld [vmem:[%s4032_s7 + $0x8] sm:$0xff] }
0x2ab2   :  { %3049 = vmatpush3.msra.mxu0 %v2608_v46 }
0x2ab4   :  { %1855 = vrot.lane.b32.xlu0 %v3845_v51, %s3374_s3 }
0x2ab5   :  { %2003 = vrot.lane.b32.xlu1 %v3872_v30, %s3374_s3 }
0x2ab8   :  { %2151 = vrot.lane.b32.xlu0 %v3898_v27, %s3374_s3 }
0x2ab9   :  { %2299 = vrot.lane.b32.xlu1 %v3924_v62, %s3374_s3 }
0x2abc   :  { %2447 = vrot.lane.b32.xlu0 %v2443_v6, %s3374_s3 }
0x2abd   :  { %1710 = vrot.lane.b32.xlu1 %v3820_v19, %s3374_s3  ;;  %v2605_v19 = vld [vmem:[%s4032_s7] sm:$0xff] }
0x2ac0   :  { %1564 = vrot.lane.b32.xlu0 %v3791_v41, %s3374_s3  ;;  %v2607_v41 = vld [vmem:[%s4032_s7 + $0x10] sm:$0xff] }
0x2ac1   :  { %2005 = vrot.lane.b32.xlu1 %v3874_v31, %s3374_s3  ;;  %3050 = vmatprep.subr.mxu0 %v2607_v41 }
0x2ac2   :  { %3051 = vmatpush3.msra.mxu0 %v2607_v41 }
0x2ac3   :  { %3052 = vmatprep.subr.mxu0 %v2606_v18 }
0x2ac4   :  { %1857 = vrot.lane.b32.xlu0 %v3847_v52, %s3374_s3  ;;  %3053 = vmatpush3.msra.mxu0 %v2606_v18 }
0x2ac5   :  { %2301 = vrot.lane.b32.xlu1 %v3926_v63, %s3374_s3  ;;  %3054 = vmatprep.subr.mxu0 %v2605_v19 }
0x2ac6   :  { %3055 = vmatpush3.msra.mxu0 %v2605_v19 }
0x2ac8   :  { %2153 = vrot.lane.b32.xlu0 %v3900_v28, %s3374_s3 }
0x2acc   :  { %2449 = vrot.lane.b32.xlu0 %v3941_v7, %s3374_s3 }
0x2b1e   :  { %v2586_v51 = vpop.permute.xlu0 %2585 }
0x2b1f   :  { %v2588_v52 = vpop.permute.xlu1 %2587  ;;  %v2591_v30 = vmul.f32 %v3316_v9, %v2586_v51 }
0x2b20   :  { %v2592_v27 = vmul.f32 %v3318_v17, %v2588_v52 }
0x2b21   :  { %2595 = vrot.lane.b32.xlu1 %v2591_v30, %s3374_s3 }
0x2b22   :  { %v1563_v31 = vpop.permute.xlu0 %1562 }
0x2b23   :  { %v1709_v28 = vpop.permute.xlu1 %1708  ;;  %1568 = vst.msk [vmem:[#allocation2] sm:$0x1] %vm294_vm5, %v1563_v31 }
0x2b24   :  { %1714 = vst.msk [vmem:[#allocation2] sm:$0x2] %vm442_vm6, %v1709_v28 }
0x2b25   :  { %2597 = vrot.lane.b32.xlu1 %v2592_v27, %s3374_s3 }
0x2b26   :  { %v1856_v62 = vpop.permute.xlu0 %1855 }
0x2b27   :  { %v2004_v63 = vpop.permute.xlu1 %2003  ;;  %1861 = vst.msk [vmem:[#allocation2] sm:$0x4] %vm590_vm7, %v1856_v62 }
0x2b28   :  { %2009 = vst.msk [vmem:[#allocation2] sm:$0x8] %vm739_vm8, %v2004_v63 }
0x2b2a   :  { %v2152_v37 = vpop.permute.xlu0 %2151 }
0x2b2b   :  { %v2300_v1 = vpop.permute.xlu1 %2299  ;;  %2157 = vst.msk [vmem:[#allocation2] sm:$0x10] %vm888_vm9, %v2152_v37 }
0x2b2c   :  { %2305 = vst.msk [vmem:[#allocation2] sm:$0x20] %vm1037_vm10, %v2300_v1 }
0x2b2e   :  { %v2448_v44 = vpop.permute.xlu0 %2447 }
0x2b2f   :  { %v1711_v38 = vpop.permute.xlu1 %1710  ;;  %2453 = vst.msk [vmem:[#allocation2] sm:$0x40] %vm1186_vm11, %v2448_v44 }
0x2b30   :  { %1715 = vst.msk [vmem:[#allocation2 + $0x8] sm:$0x2] %vm442_vm6, %v1711_v38 }
0x2b32   :  { %v1565_v22 = vpop.permute.xlu0 %1564 }
0x2b33   :  { %v2006_v21 = vpop.permute.xlu1 %2005  ;;  %1569 = vst.msk [vmem:[#allocation2 + $0x8] sm:$0x1] %vm294_vm5, %v1565_v22 }
0x2b34   :  { %2010 = vst.msk [vmem:[#allocation2 + $0x8] sm:$0x8] %vm739_vm8, %v2006_v21 }
0x2b36   :  { %v1858_v60 = vpop.permute.xlu0 %1857 }
0x2b37   :  { %v2302_v0 = vpop.permute.xlu1 %2301  ;;  %1862 = vst.msk [vmem:[#allocation2 + $0x8] sm:$0x4] %vm590_vm7, %v1858_v60 }
0x2b38   :  { %2306 = vst.msk [vmem:[#allocation2 + $0x8] sm:$0x20] %vm1037_vm10, %v2302_v0 }
0x2b3a   :  { %v2154_v45 = vpop.permute.xlu0 %2153 }
0x2b3b   :  { %2158 = vst.msk [vmem:[#allocation2 + $0x8] sm:$0x10] %vm888_vm9, %v2154_v45 }
0x2b3e   :  { %v2450_v61 = vpop.permute.xlu0 %2449 }
0x2b3f   :  { %2454 = vst.msk [vmem:[#allocation2 + $0x8] sm:$0x40] %vm1186_vm11, %v2450_v61 }
0x2b93   :  { %v2596_v12 = vpop.permute.xlu1 %2595 }
0x2b94   :  { %2601 = vst.msk [vmem:[#allocation2] sm:$0x80] %vm1335_vm12, %v2596_v12 }
0x2b97   :  { %v2598_v13 = vpop.permute.xlu1 %2597 }
0x2b98   :  { %2602 = vst.msk [vmem:[#allocation2 + $0x8] sm:$0x80] %vm1335_vm12, %v2598_v13 }
0x2b9b   :  { %v2603_v39 = vld [vmem:[#allocation2] sm:$0xff] }
0x2b9c   :  { %3056 = vmatprep.mubr.msk.f32.mxu0 %vm158_vm4, %v2603_v39 }
0x2b9f   :  { %v2604_v40 = vld [vmem:[#allocation2 + $0x8] sm:$0xff] }
0x2ba0   :  { %3057 = vmatmul.mubr.msk.f32.vlgmr.msra.gmra.mxu0 %vm158_vm4, %v2604_v40 }
0x2c60   :  { %v3058_v42 = vpop.f32.mrf.mxu0 }
0x2c61   :  { %v2694_v6 = vadd.f32 %v3058_v42, %v2758_v4 }
0x2c62   :  { %v2688_v7 = vpop.f32.mrf.mxu0 }
0x2c63   :  { %2698 = vst.msk [vmem:[%s4034_s9 + $0x8] sm:$0xff] %vm72_vm2, %v2694_v6  ;;  %v2689_v43 = vadd.f32 %v2758_v4, %v2688_v7 }
0x2c65   :  { %2697 = vst.msk [vmem:[%s4034_s9] sm:$0xff] %vm72_vm2, %v2689_v43 }
0x2c66   :  { %2703 = vsyncpa [#allocation4], 1 }
0x2c67   :  { %2704 = vsyncpa [#allocation6], 1 }

</bundles_post_ra>
